<compile_context>
chip_gen: v5e
topology: v5e:2x2
jax: 0.10.0
libtpu: 0.0.40
codegen_flags: <defaults>
</compile_context>

<pallas_src>
import jax
import jax.numpy as jnp
from jax.experimental import pallas as pl
from jax.experimental.pallas import tpu as pltpu


def _round_up(x, m):
    return (x + m - 1) // m * m


# ----------------------------------------------------------------------------
# Fused Pallas kernel (whole network, B images per grid step)
# ----------------------------------------------------------------------------
def _make_fused_kernel(B, Mp, H2, W2, SW, WpT, GUARD, M2, C2):
    BM = B * Mp                       # pooled pixels per grid step

    def kernel(x1_ref, w1_ref, b1_ref, wt_ref, bt_ref, w2_ref, b2_ref,
               sel_ref, wfc_ref, bfc_ref, o_ref, pad_ref):
        # ---- layer1: conv3x3(3->C1); BN scale folded into bf16 weights ----
        y1 = jnp.dot(x1_ref[0], w1_ref[...], preferred_element_type=jnp.float32)
        y1 = jnp.maximum(y1 + b1_ref[...], 0.0)                       # (4*BM, C1)

        # ---- maxpool 2x2/2 fused: rows pre-grouped window-position-major ----
        pooled = jnp.maximum(
            jnp.maximum(y1[0 * BM:1 * BM], y1[1 * BM:2 * BM]),
            jnp.maximum(y1[2 * BM:3 * BM], y1[3 * BM:4 * BM]))        # (BM, C1)

        # ---- transition: conv1x1(C1->Ct) + bias + ReLU ----
        yt = jnp.dot(pooled.astype(jnp.bfloat16), wt_ref[...],
                     preferred_element_type=jnp.float32)
        yt = jnp.maximum(yt + bt_ref[...], 0.0)                       # (BM, Ct)
        yt_bf = yt.astype(jnp.bfloat16)

        # ---- scatter into a zero-padded bf16 spatial scratch.  Flattened layout:
        #      flat = GUARD + h_pad*WpT + col, images packed side-by-side along the
        #      width (slot width SW = W2+2, halo columns stay zero).  Full zeroing
        #      every step keeps halo/junk finite and is per-core-scratch safe. ----
        pad_ref[...] = jnp.zeros_like(pad_ref)
        for b in range(B):
            for h in range(H2):
                src = b * Mp + h * W2
                dst = GUARD + (h + 1) * WpT + b * SW + 1
                pad_ref[dst:dst + W2, :] = yt_bf[src:src + W2, :]

        # ---- layer2: conv3x3(Ct->C2) as 9 shifted bf16 matmuls, f32 accumulator ----
        # TODO(synk): derive dx=0/dx=2 operands from the aligned dx=1 slice with
        # pltpu.roll to avoid the 6 non-aligned slice loads.
        acc = jnp.zeros((M2, C2), jnp.float32)
        for dy in range(3):
            for dx in range(3):
                s = GUARD + dy * WpT + dx
                acc += jnp.dot(pad_ref[s:s + M2, :], w2_ref[dy * 3 + dx],
                               preferred_element_type=jnp.float32)
        y2 = jnp.maximum(acc + b2_ref[...], 0.0)                      # (M2, C2)

        # ---- global avg-pool (per-image selector matmul; 1/(H2*W2) folded into
        #      sel) + FC into a lane-dense 128-wide logit slab ----
        feat = jnp.dot(sel_ref[...], y2, preferred_element_type=jnp.float32)  # (B, C2)
        o_ref[0] = jnp.dot(feat, wfc_ref[...],
                           preferred_element_type=jnp.float32) + bfc_ref[...]

    return kernel


# ----------------------------------------------------------------------------
# Glue: BN folding, weight reshaping, conv1 patches, pallas_call wrapper
# ----------------------------------------------------------------------------
def fold_bn(conv_b, gamma, beta, mean, var, eps=1e-5):
    scale = gamma / jnp.sqrt(var + eps)
    bias = (conv_b - mean) * scale + beta
    return scale[None, :].astype(jnp.float32), bias[None, :].astype(jnp.float32)


def w3x3_to_mat(w):          # (Cout, Cin, 3, 3) -> (9*Cin, Cout), (ky,kx,Cin) order
    cout = w.shape[0]
    return jnp.transpose(w, (2, 3, 1, 0)).reshape(-1, cout)


def resnet10_forward(x_nchw, p, block_images=8):
    N, Cin, H, W = x_nchw.shape
    H2, W2 = H // 2, W // 2
    Mp = H2 * W2
    C1 = p["conv1_w"].shape[0]                      # 64
    Ct = p["convt_w"].shape[0]                      # 128
    C2 = p["conv2_w"].shape[0]                      # 128
    NCLS = p["fc_w"].shape[0]                       # 10
    NCLS_PAD = _round_up(max(NCLS, 128), 128)       # lane-dense logits
    K1 = 9 * Cin

    # Images per grid step: amortize per-step overhead & grow matmul M, but keep
    # >= 2 grid steps when N >= 2 so both v7x TensorCores get work.
    B = 1 if N <= 1 else max(1, min(block_images, N // 2))
    G = -(-N // B)
    Npad = G * B

    SW = W2 + 2                                     # per-image slot width (own halos)
    WpT = _round_up(B * SW, 8)                      # packed padded width, all images
    GUARD = (-(WpT + 1)) % 8                        # leading zero rows (bounds + align)
    M2 = H2 * WpT                                   # layer2 matmul M (incl. junk cols)
    PAD_ROWS = _round_up(GUARD + 2 * WpT + 2 + M2, 16)

    # ---- conv1 input: 3x3 im2col (K=9*Cin); rows grouped (window-pos, image, pixel)
    #      so the 2x2 maxpool is a max of 4 contiguous row blocks in the kernel. ----
    if Npad != N:
        x_nchw = jnp.pad(x_nchw, ((0, Npad - N), (0, 0), (0, 0), (0, 0)))
    x = jnp.transpose(x_nchw, (0, 2, 3, 1))                            # NHWC
    xp = jnp.pad(x, ((0, 0), (1, 1), (1, 1), (0, 0)))
    cols = jnp.concatenate(
        [xp[:, dy:dy + H, dx:dx + W, :] for dy in range(3) for dx in range(3)],
        axis=-1)                                                       # (Npad, H, W, K1)
    wins = jnp.stack(
        [cols[:, hw::2, ww::2, :].reshape(Npad, Mp, K1)
         for hw in range(2) for ww in range(2)], axis=0)               # (4, Npad, Mp, K1)
    x1 = (wins.reshape(4, G, B, Mp, K1)
              .transpose(1, 0, 2, 3, 4)
              .reshape(G, 4 * B * Mp, K1)
              .astype(jnp.bfloat16))                                   # (G, 4*B*Mp, K1)
    # TODO(synk): for larger H,W move conv1 to the same in-kernel shifted-matmul
    # scheme as conv2 instead of this wrapper-side im2col.

    # ---- weights: BN scale folded into bf16 matmul weights; biases stay f32 ----
    s1, b1 = fold_bn(p["conv1_b"], p["bn1_g"], p["bn1_b"], p["bn1_m"], p["bn1_v"])
    w1 = (w3x3_to_mat(p["conv1_w"]) * s1).astype(jnp.bfloat16)         # (K1, C1)
    st, bt = fold_bn(p["convt_b"], p["bnt_g"], p["bnt_b"], p["bnt_m"], p["bnt_v"])
    wt = (p["convt_w"][:, :, 0, 0].T * st).astype(jnp.bfloat16)        # (C1, Ct)
    s2, b2 = fold_bn(p["conv2_b"], p["bn2_g"], p["bn2_b"], p["bn2_m"], p["bn2_v"])
    w2 = (jnp.transpose(p["conv2_w"], (2, 3, 1, 0)).reshape(9, Ct, C2)
          * s2).astype(jnp.bfloat16)                                   # (9, Ct, C2)
    wfc = jnp.zeros((C2, NCLS_PAD), jnp.float32).at[:, :NCLS].set(
        p["fc_w"].T.astype(jnp.float32))
    bfc = jnp.zeros((1, NCLS_PAD), jnp.float32).at[0, :NCLS].set(p["fc_b"])

    # ---- per-image avg-pool selector (1/(H2*W2) folded in), built once here ----
    c = jnp.arange(M2, dtype=jnp.int32) % WpT
    bidx = jnp.arange(B, dtype=jnp.int32)
    sel = jnp.where((c[None, :] // SW == bidx[:, None]) & ((c[None, :] % SW) < W2),
                    1.0 / float(Mp), 0.0).astype(jnp.float32)          # (B, M2)

    kernel = _make_fused_kernel(B, Mp, H2, W2, SW, WpT, GUARD, M2, C2)

    out = pl.pallas_call(
        kernel,
        out_shape=jax.ShapeDtypeStruct((G, B, NCLS_PAD), jnp.float32),
        grid=(G,),
        in_specs=[
            pl.BlockSpec((1, 4 * B * Mp, K1), lambda g: (g, 0, 0)),    # conv1 patches
            pl.BlockSpec((K1, C1), lambda g: (0, 0)),                  # conv1 weight
            pl.BlockSpec((1, C1), lambda g: (0, 0)),                   # conv1 bias
            pl.BlockSpec((C1, Ct), lambda g: (0, 0)),                  # transition weight
            pl.BlockSpec((1, Ct), lambda g: (0, 0)),                   # transition bias
            pl.BlockSpec((9, Ct, C2), lambda g: (0, 0, 0)),            # conv2 tap weights
            pl.BlockSpec((1, C2), lambda g: (0, 0)),                   # conv2 bias
            pl.BlockSpec((B, M2), lambda g: (0, 0)),                   # avg-pool selector
            pl.BlockSpec((C2, NCLS_PAD), lambda g: (0, 0)),            # fc weight (padded)
            pl.BlockSpec((1, NCLS_PAD), lambda g: (0, 0)),             # fc bias (padded)
        ],
        out_specs=pl.BlockSpec((1, B, NCLS_PAD), lambda g: (g, 0, 0)),
        scratch_shapes=[pltpu.VMEM((PAD_ROWS, Ct), jnp.bfloat16)],     # padded layer2 input
        compiler_params=pltpu.CompilerParams(
            dimension_semantics=("parallel",)),
    )(x1, w1, b1, wt, bt, w2, b2, sel, wfc, bfc)

    return out.reshape(G * B, NCLS_PAD)[:N, :NCLS]


resnet10_forward_jit = jax.jit(resnet10_forward, static_argnames=("block_images",))


# ----------------------------------------------------------------------------
# Deterministic parameter initialization (same shapes as the PyTorch module)
# ----------------------------------------------------------------------------
def init_params(key):
    ks = iter(jax.random.split(key, 24))
    p = {}

    def conv_block(name, cout, cin, k):
        fan_in = cin * k * k
        p[f"{name}_w"] = jax.random.normal(next(ks), (cout, cin, k, k), jnp.float32) / jnp.sqrt(fan_in)
        p[f"{name}_b"] = 0.1 * jax.random.normal(next(ks), (cout,), jnp.float32)

    def bn_block(name, c):
        p[f"{name}_g"] = 1.0 + 0.1 * jax.random.normal(next(ks), (c,), jnp.float32)
        p[f"{name}_b"] = 0.1 * jax.random.normal(next(ks), (c,), jnp.float32)
        p[f"{name}_m"] = 0.1 * jax.random.normal(next(ks), (c,), jnp.float32)
        p[f"{name}_v"] = 0.5 + jax.random.uniform(next(ks), (c,), jnp.float32)

    conv_block("conv1", 64, 3, 3);    bn_block("bn1", 64)
    conv_block("convt", 128, 64, 1);  bn_block("bnt", 128)
    conv_block("conv2", 128, 128, 3); bn_block("bn2", 128)
    p["fc_w"] = jax.random.normal(next(ks), (10, 128), jnp.float32) / jnp.sqrt(128.0)
    p["fc_b"] = 0.1 * jax.random.normal(next(ks), (10,), jnp.float32)
    return p


# ----------------------------------------------------------------------------
# Pure-JAX reference (mirrors the PyTorch forward, eval-mode BN), f32
# ----------------------------------------------------------------------------
def reference_forward(x, p, eps=1e-5):
    P = jax.lax.Precision.HIGHEST

    def conv(x, w, b, pad):
        y = jax.lax.conv_general_dilated(
            x, w, (1, 1), [(pad, pad), (pad, pad)],
            dimension_numbers=("NCHW", "OIHW", "NCHW"), precision=P)
        return y + b[None, :, None, None]

    def bn(x, g, bt, m, v):
        s = g / jnp.sqrt(v + eps)
        return (x - m[None, :, None, None]) * s[None, :, None, None] + bt[None, :, None, None]

    y = jax.nn.relu(bn(conv(x, p["conv1_w"], p["conv1_b"], 1),
                       p["bn1_g"], p["bn1_b"], p["bn1_m"], p["bn1_v"]))
    y = jax.lax.reduce_window(y, -jnp.inf, jax.lax.max, (1, 1, 2, 2), (1, 1, 2, 2), "VALID")
    y = jax.nn.relu(bn(conv(y, p["convt_w"], p["convt_b"], 0),
                       p["bnt_g"], p["bnt_b"], p["bnt_m"], p["bnt_v"]))
    y = jax.nn.relu(bn(conv(y, p["conv2_w"], p["conv2_b"], 1),
                       p["bn2_g"], p["bn2_b"], p["bn2_m"], p["bn2_v"]))
    y = jnp.mean(y, axis=(2, 3))
    return y @ p["fc_w"].T + p["fc_b"]


if __name__ == "__main__":
    key = jax.random.PRNGKey(0)
    kx, kp = jax.random.split(key)
    params = init_params(kp)

    # N=2 exercises the B=1 path (grid=2, keeps both v7x cores busy at tiny N);
    # N=8 exercises the packed multi-image layout (B=4 per grid step, grid=2).
    for n in (2, 8):
        x = jax.random.normal(jax.random.fold_in(kx, n), (n, 3, 16, 16), jnp.float32)
        out = jax.block_until_ready(resnet10_forward_jit(x, params))
        ref = jax.block_until_ready(reference_forward(x, params))
        assert out.shape == (n, 10), out.shape
        err = float(jnp.max(jnp.abs(out - ref)))
        # bf16 MXU operands with f32 accumulation -> ~1e-2 absolute error on logits
        assert err < 5e-2, f"N={n}: mismatch vs reference, max abs err = {err}"

    print("KERNEL_OK")
</pallas_src>

<mosaic_0001>
module attributes {stable_mosaic.version = 11 : i64} {
  func.func @kernel(%arg0: i32, %arg1: memref<1x256x27xbf16, #tpu.memory_space<vmem>>, %arg2: memref<27x64xbf16, #tpu.memory_space<vmem>>, %arg3: memref<1x64xf32, #tpu.memory_space<vmem>>, %arg4: memref<64x128xbf16, #tpu.memory_space<vmem>>, %arg5: memref<1x128xf32, #tpu.memory_space<vmem>>, %arg6: memref<9x128x128xbf16, #tpu.memory_space<vmem>>, %arg7: memref<1x128xf32, #tpu.memory_space<vmem>>, %arg8: memref<1x128xf32, #tpu.memory_space<vmem>>, %arg9: memref<128x128xf32, #tpu.memory_space<vmem>>, %arg10: memref<1x128xf32, #tpu.memory_space<vmem>>, %arg11: memref<1x1x128xf32, #tpu.memory_space<vmem>>, %arg12: memref<176x128xbf16, #tpu.memory_space<vmem>>) attributes {dimension_semantics = [#tpu.dimension_semantics<parallel>], iteration_bounds = array<i64: 2>, scalar_prefetch = 0 : i64, scratch_operands = 1 : i64, tpu.core_type = #tpu.core_type<tc>, window_params = [{transform_indices = @transform_0, window_bounds = array<i64: 1, 256, 27>}, {pipeline_mode = #tpu.pipeline_mode<synchronous>, transform_indices = @transform_1, window_bounds = array<i64: 27, 64>}, {pipeline_mode = #tpu.pipeline_mode<synchronous>, transform_indices = @transform_2, window_bounds = array<i64: 1, 64>}, {pipeline_mode = #tpu.pipeline_mode<synchronous>, transform_indices = @transform_3, window_bounds = array<i64: 64, 128>}, {pipeline_mode = #tpu.pipeline_mode<synchronous>, transform_indices = @transform_4, window_bounds = array<i64: 1, 128>}, {pipeline_mode = #tpu.pipeline_mode<synchronous>, transform_indices = @transform_5, window_bounds = array<i64: 9, 128, 128>}, {pipeline_mode = #tpu.pipeline_mode<synchronous>, transform_indices = @transform_6, window_bounds = array<i64: 1, 128>}, {pipeline_mode = #tpu.pipeline_mode<synchronous>, transform_indices = @transform_7, window_bounds = array<i64: 1, 128>}, {pipeline_mode = #tpu.pipeline_mode<synchronous>, transform_indices = @transform_8, window_bounds = array<i64: 128, 128>}, {pipeline_mode = #tpu.pipeline_mode<synchronous>, transform_indices = @transform_9, window_bounds = array<i64: 1, 128>}, {transform_indices = @transform_10, window_bounds = array<i64: 1, 1, 128>}]} {
    %c0 = arith.constant 0 : index
    %c0_0 = arith.constant 0 : index
    %c0_1 = arith.constant 0 : index
    %0 = vector.load %arg1[%c0, %c0_0, %c0_1] : memref<1x256x27xbf16, #tpu.memory_space<vmem>>, vector<1x256x27xbf16>
    %1 = vector.shape_cast %0 : vector<1x256x27xbf16> to vector<256x27xbf16>
    %c0_2 = arith.constant 0 : index
    %c0_3 = arith.constant 0 : index
    %2 = vector.load %arg2[%c0_2, %c0_3] : memref<27x64xbf16, #tpu.memory_space<vmem>>, vector<27x64xbf16>
    %cst = arith.constant dense<0.000000e+00> : vector<256x64xf32>
    %3 = tpu.matmul %1, %2, %cst {dimension_numbers = #tpu.dot_dimension_numbers<[1], [0], [0], [1], [0, 0, 1, 1], [], []>} : vector<256x27xbf16>, vector<27x64xbf16>, vector<256x64xf32> -> vector<256x64xf32>
    %c0_4 = arith.constant 0 : index
    %c0_5 = arith.constant 0 : index
    %4 = vector.load %arg3[%c0_4, %c0_5] : memref<1x64xf32, #tpu.memory_space<vmem>>, vector<1x64xf32>
    %5 = vector.broadcast %4 : vector<1x64xf32> to vector<256x64xf32>
    %6 = arith.addf %3, %5 : vector<256x64xf32>
    %cst_6 = arith.constant 0.000000e+00 : f32
    %7 = vector.broadcast %cst_6 : f32 to vector<256x64xf32>
    %8 = arith.maximumf %6, %7 : vector<256x64xf32>
    %9 = vector.extract_strided_slice %8 {offsets = [0, 0], sizes = [64, 64], strides = [1, 1]} : vector<256x64xf32> to vector<64x64xf32>
    %10 = vector.extract_strided_slice %8 {offsets = [64, 0], sizes = [64, 64], strides = [1, 1]} : vector<256x64xf32> to vector<64x64xf32>
    %11 = arith.maximumf %9, %10 : vector<64x64xf32>
    %12 = vector.extract_strided_slice %8 {offsets = [128, 0], sizes = [64, 64], strides = [1, 1]} : vector<256x64xf32> to vector<64x64xf32>
    %13 = vector.extract_strided_slice %8 {offsets = [192, 0], sizes = [64, 64], strides = [1, 1]} : vector<256x64xf32> to vector<64x64xf32>
    %14 = arith.maximumf %12, %13 : vector<64x64xf32>
    %15 = arith.maximumf %11, %14 : vector<64x64xf32>
    %16 = arith.truncf %15 : vector<64x64xf32> to vector<64x64xbf16>
    %c0_7 = arith.constant 0 : index
    %c0_8 = arith.constant 0 : index
    %17 = vector.load %arg4[%c0_7, %c0_8] : memref<64x128xbf16, #tpu.memory_space<vmem>>, vector<64x128xbf16>
    %cst_9 = arith.constant dense<0.000000e+00> : vector<64x128xf32>
    %18 = tpu.matmul %16, %17, %cst_9 {dimension_numbers = #tpu.dot_dimension_numbers<[1], [0], [0], [1], [0, 0, 1, 1], [], []>} : vector<64x64xbf16>, vector<64x128xbf16>, vector<64x128xf32> -> vector<64x128xf32>
    %c0_10 = arith.constant 0 : index
    %c0_11 = arith.constant 0 : index
    %19 = vector.load %arg5[%c0_10, %c0_11] : memref<1x128xf32, #tpu.memory_space<vmem>>, vector<1x128xf32>
    %20 = vector.broadcast %19 : vector<1x128xf32> to vector<64x128xf32>
    %21 = arith.addf %18, %20 : vector<64x128xf32>
    %cst_12 = arith.constant 0.000000e+00 : f32
    %22 = vector.broadcast %cst_12 : f32 to vector<64x128xf32>
    %23 = arith.maximumf %21, %22 : vector<64x128xf32>
    %24 = arith.truncf %23 : vector<64x128xf32> to vector<64x128xbf16>
    %cst_13 = arith.constant 0.000000e+00 : bf16
    %25 = vector.broadcast %cst_13 : bf16 to vector<176x128xbf16>
    %c0_14 = arith.constant 0 : index
    %c0_15 = arith.constant 0 : index
    %26 = vector.load %arg12[%c0_14, %c0_15] : memref<176x128xbf16, #tpu.memory_space<vmem>>, vector<176x128xbf16>
    tpu.vector_store %arg12[%c0_14, %c0_15], %25 {strides = array<i32>} : memref<176x128xbf16, #tpu.memory_space<vmem>>, vector<176x128xbf16>,
    %27 = vector.extract_strided_slice %24 {offsets = [0, 0], sizes = [8, 128], strides = [1, 1]} : vector<64x128xbf16> to vector<8x128xbf16>
    %c24 = arith.constant 24 : index
    %c0_16 = arith.constant 0 : index
    %28 = vector.load %arg12[%c24, %c0_16] : memref<176x128xbf16, #tpu.memory_space<vmem>>, vector<8x128xbf16>
    tpu.vector_store %arg12[%c24, %c0_16], %27 {strides = array<i32>} : memref<176x128xbf16, #tpu.memory_space<vmem>>, vector<8x128xbf16>,
    %29 = vector.extract_strided_slice %24 {offsets = [8, 0], sizes = [8, 128], strides = [1, 1]} : vector<64x128xbf16> to vector<8x128xbf16>
    %c40 = arith.constant 40 : index
    %c0_17 = arith.constant 0 : index
    %30 = vector.load %arg12[%c40, %c0_17] : memref<176x128xbf16, #tpu.memory_space<vmem>>, vector<8x128xbf16>
    tpu.vector_store %arg12[%c40, %c0_17], %29 {strides = array<i32>} : memref<176x128xbf16, #tpu.memory_space<vmem>>, vector<8x128xbf16>,
    %31 = vector.extract_strided_slice %24 {offsets = [16, 0], sizes = [8, 128], strides = [1, 1]} : vector<64x128xbf16> to vector<8x128xbf16>
    %c56 = arith.constant 56 : index
    %c0_18 = arith.constant 0 : index
    %32 = vector.load %arg12[%c56, %c0_18] : memref<176x128xbf16, #tpu.memory_space<vmem>>, vector<8x128xbf16>
    tpu.vector_store %arg12[%c56, %c0_18], %31 {strides = array<i32>} : memref<176x128xbf16, #tpu.memory_space<vmem>>, vector<8x128xbf16>,
    %33 = vector.extract_strided_slice %24 {offsets = [24, 0], sizes = [8, 128], strides = [1, 1]} : vector<64x128xbf16> to vector<8x128xbf16>
    %c72 = arith.constant 72 : index
    %c0_19 = arith.constant 0 : index
    %34 = vector.load %arg12[%c72, %c0_19] : memref<176x128xbf16, #tpu.memory_space<vmem>>, vector<8x128xbf16>
    tpu.vector_store %arg12[%c72, %c0_19], %33 {strides = array<i32>} : memref<176x128xbf16, #tpu.memory_space<vmem>>, vector<8x128xbf16>,
    %35 = vector.extract_strided_slice %24 {offsets = [32, 0], sizes = [8, 128], strides = [1, 1]} : vector<64x128xbf16> to vector<8x128xbf16>
    %c88 = arith.constant 88 : index
    %c0_20 = arith.constant 0 : index
    %36 = vector.load %arg12[%c88, %c0_20] : memref<176x128xbf16, #tpu.memory_space<vmem>>, vector<8x128xbf16>
    tpu.vector_store %arg12[%c88, %c0_20], %35 {strides = array<i32>} : memref<176x128xbf16, #tpu.memory_space<vmem>>, vector<8x128xbf16>,
    %37 = vector.extract_strided_slice %24 {offsets = [40, 0], sizes = [8, 128], strides = [1, 1]} : vector<64x128xbf16> to vector<8x128xbf16>
    %c104 = arith.constant 104 : index
    %c0_21 = arith.constant 0 : index
    %38 = vector.load %arg12[%c104, %c0_21] : memref<176x128xbf16, #tpu.memory_space<vmem>>, vector<8x128xbf16>
    tpu.vector_store %arg12[%c104, %c0_21], %37 {strides = array<i32>} : memref<176x128xbf16, #tpu.memory_space<vmem>>, vector<8x128xbf16>,
    %39 = vector.extract_strided_slice %24 {offsets = [48, 0], sizes = [8, 128], strides = [1, 1]} : vector<64x128xbf16> to vector<8x128xbf16>
    %c120 = arith.constant 120 : index
    %c0_22 = arith.constant 0 : index
    %40 = vector.load %arg12[%c120, %c0_22] : memref<176x128xbf16, #tpu.memory_space<vmem>>, vector<8x128xbf16>
    tpu.vector_store %arg12[%c120, %c0_22], %39 {strides = array<i32>} : memref<176x128xbf16, #tpu.memory_space<vmem>>, vector<8x128xbf16>,
    %41 = vector.extract_strided_slice %24 {offsets = [56, 0], sizes = [8, 128], strides = [1, 1]} : vector<64x128xbf16> to vector<8x128xbf16>
    %c136 = arith.constant 136 : index
    %c0_23 = arith.constant 0 : index
    %42 = vector.load %arg12[%c136, %c0_23] : memref<176x128xbf16, #tpu.memory_space<vmem>>, vector<8x128xbf16>
    tpu.vector_store %arg12[%c136, %c0_23], %41 {strides = array<i32>} : memref<176x128xbf16, #tpu.memory_space<vmem>>, vector<8x128xbf16>,
    %cst_24 = arith.constant 0.000000e+00 : f32
    %43 = vector.broadcast %cst_24 : f32 to vector<128x128xf32>
    %c7 = arith.constant 7 : index
    %c0_25 = arith.constant 0 : index
    %44 = vector.load %arg12[%c7, %c0_25] : memref<176x128xbf16, #tpu.memory_space<vmem>>, vector<128x128xbf16>
    %c0_26 = arith.constant 0 : index
    %c0_27 = arith.constant 0 : index
    %c0_28 = arith.constant 0 : index
    %45 = vector.load %arg6[%c0_26, %c0_27, %c0_28] : memref<9x128x128xbf16, #tpu.memory_space<vmem>>, vector<1x128x128xbf16>
    %46 = vector.shape_cast %45 : vector<1x128x128xbf16> to vector<128x128xbf16>
    %cst_29 = arith.constant dense<0.000000e+00> : vector<128x128xf32>
    %47 = tpu.matmul %44, %46, %cst_29 {dimension_numbers = #tpu.dot_dimension_numbers<[1], [0], [0], [1], [0, 0, 1, 1], [], []>} : vector<128x128xbf16>, vector<128x128xbf16>, vector<128x128xf32> -> vector<128x128xf32>
    %48 = arith.addf %43, %47 : vector<128x128xf32>
    %c8 = arith.constant 8 : index
    %c0_30 = arith.constant 0 : index
    %49 = vector.load %arg12[%c8, %c0_30] : memref<176x128xbf16, #tpu.memory_space<vmem>>, vector<128x128xbf16>
    %c1 = arith.constant 1 : index
    %c0_31 = arith.constant 0 : index
    %c0_32 = arith.constant 0 : index
    %50 = vector.load %arg6[%c1, %c0_31, %c0_32] : memref<9x128x128xbf16, #tpu.memory_space<vmem>>, vector<1x128x128xbf16>
    %51 = vector.shape_cast %50 : vector<1x128x128xbf16> to vector<128x128xbf16>
    %cst_33 = arith.constant dense<0.000000e+00> : vector<128x128xf32>
    %52 = tpu.matmul %49, %51, %cst_33 {dimension_numbers = #tpu.dot_dimension_numbers<[1], [0], [0], [1], [0, 0, 1, 1], [], []>} : vector<128x128xbf16>, vector<128x128xbf16>, vector<128x128xf32> -> vector<128x128xf32>
    %53 = arith.addf %48, %52 : vector<128x128xf32>
    %c9 = arith.constant 9 : index
    %c0_34 = arith.constant 0 : index
    %54 = vector.load %arg12[%c9, %c0_34] : memref<176x128xbf16, #tpu.memory_space<vmem>>, vector<128x128xbf16>
    %c2 = arith.constant 2 : index
    %c0_35 = arith.constant 0 : index
    %c0_36 = arith.constant 0 : index
    %55 = vector.load %arg6[%c2, %c0_35, %c0_36] : memref<9x128x128xbf16, #tpu.memory_space<vmem>>, vector<1x128x128xbf16>
    %56 = vector.shape_cast %55 : vector<1x128x128xbf16> to vector<128x128xbf16>
    %cst_37 = arith.constant dense<0.000000e+00> : vector<128x128xf32>
    %57 = tpu.matmul %54, %56, %cst_37 {dimension_numbers = #tpu.dot_dimension_numbers<[1], [0], [0], [1], [0, 0, 1, 1], [], []>} : vector<128x128xbf16>, vector<128x128xbf16>, vector<128x128xf32> -> vector<128x128xf32>
    %58 = arith.addf %53, %57 : vector<128x128xf32>
    %c23 = arith.constant 23 : index
    %c0_38 = arith.constant 0 : index
    %59 = vector.load %arg12[%c23, %c0_38] : memref<176x128xbf16, #tpu.memory_space<vmem>>, vector<128x128xbf16>
    %c3 = arith.constant 3 : index
    %c0_39 = arith.constant 0 : index
    %c0_40 = arith.constant 0 : index
    %60 = vector.load %arg6[%c3, %c0_39, %c0_40] : memref<9x128x128xbf16, #tpu.memory_space<vmem>>, vector<1x128x128xbf16>
    %61 = vector.shape_cast %60 : vector<1x128x128xbf16> to vector<128x128xbf16>
    %cst_41 = arith.constant dense<0.000000e+00> : vector<128x128xf32>
    %62 = tpu.matmul %59, %61, %cst_41 {dimension_numbers = #tpu.dot_dimension_numbers<[1], [0], [0], [1], [0, 0, 1, 1], [], []>} : vector<128x128xbf16>, vector<128x128xbf16>, vector<128x128xf32> -> vector<128x128xf32>
    %63 = arith.addf %58, %62 : vector<128x128xf32>
    %c24_42 = arith.constant 24 : index
    %c0_43 = arith.constant 0 : index
    %64 = vector.load %arg12[%c24_42, %c0_43] : memref<176x128xbf16, #tpu.memory_space<vmem>>, vector<128x128xbf16>
    %c4 = arith.constant 4 : index
    %c0_44 = arith.constant 0 : index
    %c0_45 = arith.constant 0 : index
    %65 = vector.load %arg6[%c4, %c0_44, %c0_45] : memref<9x128x128xbf16, #tpu.memory_space<vmem>>, vector<1x128x128xbf16>
    %66 = vector.shape_cast %65 : vector<1x128x128xbf16> to vector<128x128xbf16>
    %cst_46 = arith.constant dense<0.000000e+00> : vector<128x128xf32>
    %67 = tpu.matmul %64, %66, %cst_46 {dimension_numbers = #tpu.dot_dimension_numbers<[1], [0], [0], [1], [0, 0, 1, 1], [], []>} : vector<128x128xbf16>, vector<128x128xbf16>, vector<128x128xf32> -> vector<128x128xf32>
    %68 = arith.addf %63, %67 : vector<128x128xf32>
    %c25 = arith.constant 25 : index
    %c0_47 = arith.constant 0 : index
    %69 = vector.load %arg12[%c25, %c0_47] : memref<176x128xbf16, #tpu.memory_space<vmem>>, vector<128x128xbf16>
    %c5 = arith.constant 5 : index
    %c0_48 = arith.constant 0 : index
    %c0_49 = arith.constant 0 : index
    %70 = vector.load %arg6[%c5, %c0_48, %c0_49] : memref<9x128x128xbf16, #tpu.memory_space<vmem>>, vector<1x128x128xbf16>
    %71 = vector.shape_cast %70 : vector<1x128x128xbf16> to vector<128x128xbf16>
    %cst_50 = arith.constant dense<0.000000e+00> : vector<128x128xf32>
    %72 = tpu.matmul %69, %71, %cst_50 {dimension_numbers = #tpu.dot_dimension_numbers<[1], [0], [0], [1], [0, 0, 1, 1], [], []>} : vector<128x128xbf16>, vector<128x128xbf16>, vector<128x128xf32> -> vector<128x128xf32>
    %73 = arith.addf %68, %72 : vector<128x128xf32>
    %c39 = arith.constant 39 : index
    %c0_51 = arith.constant 0 : index
    %74 = vector.load %arg12[%c39, %c0_51] : memref<176x128xbf16, #tpu.memory_space<vmem>>, vector<128x128xbf16>
    %c6 = arith.constant 6 : index
    %c0_52 = arith.constant 0 : index
    %c0_53 = arith.constant 0 : index
    %75 = vector.load %arg6[%c6, %c0_52, %c0_53] : memref<9x128x128xbf16, #tpu.memory_space<vmem>>, vector<1x128x128xbf16>
    %76 = vector.shape_cast %75 : vector<1x128x128xbf16> to vector<128x128xbf16>
    %cst_54 = arith.constant dense<0.000000e+00> : vector<128x128xf32>
    %77 = tpu.matmul %74, %76, %cst_54 {dimension_numbers = #tpu.dot_dimension_numbers<[1], [0], [0], [1], [0, 0, 1, 1], [], []>} : vector<128x128xbf16>, vector<128x128xbf16>, vector<128x128xf32> -> vector<128x128xf32>
    %78 = arith.addf %73, %77 : vector<128x128xf32>
    %c40_55 = arith.constant 40 : index
    %c0_56 = arith.constant 0 : index
    %79 = vector.load %arg12[%c40_55, %c0_56] : memref<176x128xbf16, #tpu.memory_space<vmem>>, vector<128x128xbf16>
    %c7_57 = arith.constant 7 : index
    %c0_58 = arith.constant 0 : index
    %c0_59 = arith.constant 0 : index
    %80 = vector.load %arg6[%c7_57, %c0_58, %c0_59] : memref<9x128x128xbf16, #tpu.memory_space<vmem>>, vector<1x128x128xbf16>
    %81 = vector.shape_cast %80 : vector<1x128x128xbf16> to vector<128x128xbf16>
    %cst_60 = arith.constant dense<0.000000e+00> : vector<128x128xf32>
    %82 = tpu.matmul %79, %81, %cst_60 {dimension_numbers = #tpu.dot_dimension_numbers<[1], [0], [0], [1], [0, 0, 1, 1], [], []>} : vector<128x128xbf16>, vector<128x128xbf16>, vector<128x128xf32> -> vector<128x128xf32>
    %83 = arith.addf %78, %82 : vector<128x128xf32>
    %c41 = arith.constant 41 : index
    %c0_61 = arith.constant 0 : index
    %84 = vector.load %arg12[%c41, %c0_61] : memref<176x128xbf16, #tpu.memory_space<vmem>>, vector<128x128xbf16>
    %c8_62 = arith.constant 8 : index
    %c0_63 = arith.constant 0 : index
    %c0_64 = arith.constant 0 : index
    %85 = vector.load %arg6[%c8_62, %c0_63, %c0_64] : memref<9x128x128xbf16, #tpu.memory_space<vmem>>, vector<1x128x128xbf16>
    %86 = vector.shape_cast %85 : vector<1x128x128xbf16> to vector<128x128xbf16>
    %cst_65 = arith.constant dense<0.000000e+00> : vector<128x128xf32>
    %87 = tpu.matmul %84, %86, %cst_65 {dimension_numbers = #tpu.dot_dimension_numbers<[1], [0], [0], [1], [0, 0, 1, 1], [], []>} : vector<128x128xbf16>, vector<128x128xbf16>, vector<128x128xf32> -> vector<128x128xf32>
    %88 = arith.addf %83, %87 : vector<128x128xf32>
    %c0_66 = arith.constant 0 : index
    %c0_67 = arith.constant 0 : index
    %89 = vector.load %arg7[%c0_66, %c0_67] : memref<1x128xf32, #tpu.memory_space<vmem>>, vector<1x128xf32>
    %90 = vector.broadcast %89 : vector<1x128xf32> to vector<128x128xf32>
    %91 = arith.addf %88, %90 : vector<128x128xf32>
    %cst_68 = arith.constant 0.000000e+00 : f32
    %92 = vector.broadcast %cst_68 : f32 to vector<128x128xf32>
    %93 = arith.maximumf %91, %92 : vector<128x128xf32>
    %c0_69 = arith.constant 0 : index
    %c0_70 = arith.constant 0 : index
    %94 = vector.load %arg8[%c0_69, %c0_70] : memref<1x128xf32, #tpu.memory_space<vmem>>, vector<1x128xf32>
    %cst_71 = arith.constant dense<0.000000e+00> : vector<1x128xf32>
    %95 = tpu.matmul %94, %93, %cst_71 {dimension_numbers = #tpu.dot_dimension_numbers<[1], [0], [0], [1], [0, 0, 1, 1], [], []>} : vector<1x128xf32>, vector<128x128xf32>, vector<1x128xf32> -> vector<1x128xf32>
    %c0_72 = arith.constant 0 : index
    %c0_73 = arith.constant 0 : index
    %96 = vector.load %arg9[%c0_72, %c0_73] : memref<128x128xf32, #tpu.memory_space<vmem>>, vector<128x128xf32>
    %cst_74 = arith.constant dense<0.000000e+00> : vector<1x128xf32>
    %97 = tpu.matmul %95, %96, %cst_74 {dimension_numbers = #tpu.dot_dimension_numbers<[1], [0], [0], [1], [0, 0, 1, 1], [], []>} : vector<1x128xf32>, vector<128x128xf32>, vector<1x128xf32> -> vector<1x128xf32>
    %c0_75 = arith.constant 0 : index
    %c0_76 = arith.constant 0 : index
    %98 = vector.load %arg10[%c0_75, %c0_76] : memref<1x128xf32, #tpu.memory_space<vmem>>, vector<1x128xf32>
    %99 = arith.addf %97, %98 : vector<1x128xf32>
    %c0_77 = arith.constant 0 : index
    %c0_78 = arith.constant 0 : index
    %c0_79 = arith.constant 0 : index
    %100 = vector.load %arg11[%c0_77, %c0_78, %c0_79] : memref<1x1x128xf32, #tpu.memory_space<vmem>>, vector<1x1x128xf32>
    %101 = vector.shape_cast %100 : vector<1x1x128xf32> to vector<1x128xf32>
    %102 = vector.shape_cast %99 : vector<1x128xf32> to vector<1x1x128xf32>
    tpu.vector_store %arg11[%c0_77, %c0_78, %c0_79], %102 {strides = array<i32>} : memref<1x1x128xf32, #tpu.memory_space<vmem>>, vector<1x1x128xf32>,
    return
  }
  func.func @transform_0(%arg0: i32) -> (i32, i32, i32) {
    %c0_i32 = arith.constant 0 : i32
    %c0_i32_0 = arith.constant 0 : i32
    %c0_i32_1 = arith.constant 0 : i32
    return %arg0, %c0_i32, %c0_i32_0 : i32, i32, i32
  }
  func.func @transform_1(%arg0: i32) -> (i32, i32) {
    %c0_i32 = arith.constant 0 : i32
    %c0_i32_0 = arith.constant 0 : i32
    %c0_i32_1 = arith.constant 0 : i32
    return %c0_i32, %c0_i32_0 : i32, i32
  }
  func.func @transform_2(%arg0: i32) -> (i32, i32) {
    %c0_i32 = arith.constant 0 : i32
    %c0_i32_0 = arith.constant 0 : i32
    %c0_i32_1 = arith.constant 0 : i32
    return %c0_i32, %c0_i32_0 : i32, i32
  }
  func.func @transform_3(%arg0: i32) -> (i32, i32) {
    %c0_i32 = arith.constant 0 : i32
    %c0_i32_0 = arith.constant 0 : i32
    %c0_i32_1 = arith.constant 0 : i32
    return %c0_i32, %c0_i32_0 : i32, i32
  }
  func.func @transform_4(%arg0: i32) -> (i32, i32) {
    %c0_i32 = arith.constant 0 : i32
    %c0_i32_0 = arith.constant 0 : i32
    %c0_i32_1 = arith.constant 0 : i32
    return %c0_i32, %c0_i32_0 : i32, i32
  }
  func.func @transform_5(%arg0: i32) -> (i32, i32, i32) {
    %c0_i32 = arith.constant 0 : i32
    %c0_i32_0 = arith.constant 0 : i32
    %c0_i32_1 = arith.constant 0 : i32
    %c0_i32_2 = arith.constant 0 : i32
    return %c0_i32, %c0_i32_0, %c0_i32_1 : i32, i32, i32
  }
  func.func @transform_6(%arg0: i32) -> (i32, i32) {
    %c0_i32 = arith.constant 0 : i32
    %c0_i32_0 = arith.constant 0 : i32
    %c0_i32_1 = arith.constant 0 : i32
    return %c0_i32, %c0_i32_0 : i32, i32
  }
  func.func @transform_7(%arg0: i32) -> (i32, i32) {
    %c0_i32 = arith.constant 0 : i32
    %c0_i32_0 = arith.constant 0 : i32
    %c0_i32_1 = arith.constant 0 : i32
    return %c0_i32, %c0_i32_0 : i32, i32
  }
  func.func @transform_8(%arg0: i32) -> (i32, i32) {
    %c0_i32 = arith.constant 0 : i32
    %c0_i32_0 = arith.constant 0 : i32
    %c0_i32_1 = arith.constant 0 : i32
    return %c0_i32, %c0_i32_0 : i32, i32
  }
  func.func @transform_9(%arg0: i32) -> (i32, i32) {
    %c0_i32 = arith.constant 0 : i32
    %c0_i32_0 = arith.constant 0 : i32
    %c0_i32_1 = arith.constant 0 : i32
    return %c0_i32, %c0_i32_0 : i32, i32
  }
  func.func @transform_10(%arg0: i32) -> (i32, i32, i32) {
    %c0_i32 = arith.constant 0 : i32
    %c0_i32_0 = arith.constant 0 : i32
    %c0_i32_1 = arith.constant 0 : i32
    return %arg0, %c0_i32, %c0_i32_0 : i32, i32, i32
  }
}

</mosaic_0001>

<bundles_post_ra>
// kernel: resnet10_forward.1
= control target key start
LH: loop header
LB: loop body
LE: loop exit
PB: predicated region body
PF: predicated region fallthrough
CT: control target
= control target key end

     0   :  { %s4943_s0 = inlined_call_operand.vmem [shape: bf16[2,256,27], index: 0, kind: input, shape index: {}]   ;;  %s4944_s1 = inlined_call_operand.vmem [shape: bf16[27,64], index: 1, kind: input, shape index: {}]   ;;  %s4945_s2 = inlined_call_operand.vmem [shape: f32[1,64], index: 2, kind: input, shape index: {}]   ;;  %s4946_s3 = inlined_call_operand.vmem [shape: bf16[64,128], index: 3, kind: input, shape index: {}]   ;;  %s4947_s4 = inlined_call_operand.vmem [shape: f32[1,128], index: 4, kind: input, shape index: {}]   ;;  %s4948_s5 = inlined_call_operand.vmem [shape: bf16[9,128,128], index: 5, kind: input, shape index: {}]   ;;  %s4949_s6 = inlined_call_operand.vmem [shape: f32[1,128], index: 6, kind: input, shape index: {}]   ;;  %s4950_s7 = inlined_call_operand.vmem [shape: f32[1,128], index: 7, kind: input, shape index: {}]   ;;  %s4951_s8 = inlined_call_operand.vmem [shape: f32[128,128], index: 8, kind: input, shape index: {}]   ;;  %s4952_s9 = inlined_call_operand.vmem [shape: f32[1,128], index: 9, kind: input, shape index: {}]   ;;  %s4953_s10 = inlined_call_operand.hbm [shape: f32[2,1,128], index: 10, kind: output, shape index: {}]  }
   0x1   :  { %4954 = sst [smem:[#allocation6_spill]] %s4943_s0 }
   0x2   :  { %15 = vsyncpa [#allocation4], 0 }
   0x3   :  { %17 = vsyncpa [#allocation4 + $0x1], 0  ;;  %s4163_s13 = smov 0   ;;  %s4165_s14 = smov 0  }
   0x4   :  { %s4167_s15 = smov 0   ;;  %s4169_s16 = smov 0  }
   0x5 LB: > { %s4184_s17 = sadd.s32 4294967295, %s4104_s16   ;;  %s3020_s18 = sadd.s32 4294967294, %s4104_s16   ;;  %s4104_s16 = sphi %s4169_s16, %s4961_s16   ;;  %s4100_s15 = sphi %s4167_s15, %s4960_s15   ;;  %s4096_s14 = sphi %s4165_s14, %s4959_s14   ;;  %s4092_s13 = sphi %s4163_s13, %s4958_s13  }
   0x6   : > { %s4188_s19 = sadd.s32 1, %s4104_s16   ;;  %s245_s20 = sadd.s32 1, %s4100_s15 }
   0x7   : > { %s242_s21 = ssub.s32 %s4104_s16, %s4188_s19  ;;  %p255_p0 = scmp.ne.s32.totalorder %s4100_s15, %s4096_s14 }
   0x8   : > { %p243_p1 = scmp.eq.s32.totalorder %s242_s21, 0  ;;  %p256_p2 = scmp.eq.s32.totalorder %s4184_s17, 1 }
   0x9   : > { %p261_p3 = scmp.ne.s32.totalorder %s4096_s14, %s4092_s13  ;;  %p262_p4 = scmp.eq.s32.totalorder %s3020_s18, 1 }
   0xa   : > { %s4199_s22 = scalar_select %p243_p1, %s4100_s15, %s245_s20  }
   0xb   : > { %p4201_p5 = por %p256_p2, %p255_p0  ;;  %p4205_p6 = por %p262_p4, %p261_p3 }
   0xc   : > { %p3023_p7 = scmp.ge.s32.totalorder %s4104_s16, 1  ;;  %p315_p8 = scmp.lt.s32.totalorder %s4104_s16, 3 }
   0xe   : > { %p316_p9 = pnand %p3023_p7, %p315_p8 }
   0xf   : > { %p352_p10 = scmp.lt.s32.totalorder (!%p316_p9), %s4184_s17, 1  ;;  %s4957_s0 = sld [smem:[#allocation6_spill]] (!%p316_p9) }
  0x10   : > { %319 = sbr.rel (%p316_p9) target bundleno = 1319 (0x527), region = 60  ;;  %s2961_s18 = scalar_lea.hbm (!%p316_p9), %s4953_s10, %s4184_s17 }
  0x11   : > { %s2965_s27 = sshll.u32 (!%p316_p9), %s2961_s18, 4  ;;  %s4062_s12 = scalar_lea.hbm (!%p316_p9), %s4953_s10, 2  ;;  %s2966_s27 = int_to_ptr.hbm [resolvable:$true] %s2965_s27 }
  0x15   : > { %v3096_v0 = vld [vmem:[%s4944_s1 + $0x8] sm:$0xf]  ;;  %v3666_v1 = vld [vmem:[%s4944_s1 + $0x8] sm:$0x30]  ;;  %vm538_vm0 = vcmask 1044480   ;;  %vm539_vm1 = vcmask 1045504  }
  0x16   : > { %v3097_v2 = vor.u32 %v3666_v1, %v3096_v0  ;;  %v4106_v3 = vmov 65535   ;;  %s353_s29 = scalar_select %p352_p10, %s4184_s17, 1  ;;  %v3665_v7 = vld [vmem:[%s4944_s1] sm:$0xff]  ;;  %vm489_vm2 = vcmask 220160   ;;  %vm730_vm3 = vcmask 523264  }
  0x17   : > { %v540_v4 = vsel %vm538_vm0, 4294967295, %v4106_v3  ;;  %v4262_v28 = vld [vmem:[%s4945_s2] ss:$0 sm:$0xff]  ;;  %v3669_v3 = vld [vmem:[%s4946_s3 + $0x10] sm:$0xff]  ;;  %vm1287_vm4 = vsmask.f32 7424 }
  0x18   : > { %v541_v5 = vsel %vm539_vm1, %v540_v4, 0  ;;  %s3648_s30 = sshll.u32 %s353_s29, 7  ;;  %vm1024_vm5 = vsmask.f32 4352  ;;  %s4056_s29 = sshra.s32 %s2966_s27, 4  ;;  %s4057_s29 = int_to_ptr.hbm [resolvable:$true] %s4056_s29 }
  0x19   : > { %v543_v6 = vand.u32 %v3097_v2, %v541_v5  ;;  %s4225_s21 = scalar_lea.vmem %s4957_s0, %s3648_s30  ;;  %v3670_v2 = vld [vmem:[%s4946_s3 + $0x18] sm:$0xff]  ;;  %v3668_v5 = vld [vmem:[%s4946_s3 + $0x8] sm:$0xff]  ;;  %s350_s30 = sand.u32 1, %s4096_s14  }
  0x1a   : > { %v3649_v8 = vld [vmem:[%s4225_s21] sm:$0xff]  ;;  %v3650_v9 = vld [vmem:[%s4225_s21 + $0x8] sm:$0xff]  ;;  %v3651_v10 = vld [vmem:[%s4225_s21 + $0x10] sm:$0xff]  ;;  %747 = vmatpush.bf16.msra.mxu1 %v3670_v2  ;;  %s351_s25 = scalar_lea.vmem [#allocation3], %s350_s30  ;;  %s2953_s28 = scalar_lea.sflag [#allocation4], %s350_s30 }
  0x1b   : > { %551 = vmatpush.bf16.msra.mxu0 %v543_v6  ;;  %v3652_v11 = vld [vmem:[%s4225_s21 + $0x18] sm:$0xff]  ;;  %v3653_v12 = vld [vmem:[%s4225_s21 + $0x20] sm:$0xff]  ;;  %v3654_v13 = vld [vmem:[%s4225_s21 + $0x28] sm:$0xff]  ;;  %s2963_s26 = sshll.u32 %s351_s25, 4  ;;  %s4058_s0 = scalar_lea.hbm %s4057_s29, 1  ;;  %s2964_s26 = int_to_ptr.vmem [resolvable:$true] %s2963_s26 }
  0x1c   : > { %v3655_v14 = vld [vmem:[%s4225_s21 + $0x30] sm:$0xff]  ;;  %v3656_v15 = vld [vmem:[%s4225_s21 + $0x38] sm:$0xff]  ;;  %v3657_v16 = vld [vmem:[%s4225_s21 + $0x40] sm:$0xff]  ;;  %p4059_p11 = scmp.ne.s32.totalorder %s4057_s29, %s4058_s0  ;;  %p4063_p0 = scmp.lt.s32.totalorder %s4057_s29, %s4953_s10 }
  0x1d   : > { %v3658_v19 = vld [vmem:[%s4225_s21 + $0x48] sm:$0xff]  ;;  %v3659_v22 = vld [vmem:[%s4225_s21 + $0x50] sm:$0xff]  ;;  %v3660_v25 = vld [vmem:[%s4225_s21 + $0x58] sm:$0xff]  ;;  %p4064_p1 = scmp.lt.s32.totalorder %s4062_s12, %s4058_s0 }
  0x1e   : > { %v3661_v30 = vld [vmem:[%s4225_s21 + $0x60] sm:$0xff]  ;;  %v3662_v38 = vld [vmem:[%s4225_s21 + $0x68] sm:$0xff]  ;;  %v3663_v46 = vld [vmem:[%s4225_s21 + $0x70] sm:$0xff]  ;;  %748 = vmatpush.bf16.msra.mxu1 %v3669_v3  ;;  %p4060_p12 = pnand %p4059_p11, %p4201_p5 }
  0x1f   : > { %552 = vmatpush.bf16.msra.mxu0 %v3665_v7  ;;  %v3664_v54 = vld [vmem:[%s4225_s21 + $0x78] sm:$0xff]  ;;  %v3667_v6 = vld [vmem:[%s4946_s3] sm:$0xff]  ;;  %v3685_v2 = vld [vmem:[%s4948_s5 + $0x70] sm:$0xff]  ;;  %p4065_p2 = por %p4064_p1, %p4063_p0 }
  0x20   : > { %v3677_v3 = vld [vmem:[%s4948_s5 + $0x30] sm:$0xff]  ;;  %p4061_p13 = pneg %p4060_p12 }
  0x22   : > { %3098 = vmatmul.msk.bf16.vlgmr.msra.gmra.mxu0 %vm489_vm2, %v3649_v8  ;;  %749 = vmatpush.bf16.msra.mxu1 %v3668_v5  ;;  %v3701_v5 = vld [vmem:[%s4948_s5 + $0xb0] sm:$0xff]  ;;  %p4066_p3 = pnand %p4065_p2, %p4061_p13 }
  0x26   : > { %750 = vmatpush.bf16.msra.mxu1 %v3667_v6 }
  0x32   : > { %3099 = vmatmul.msk.bf16.gmra.mxu0 %vm489_vm2, %v3650_v9 }
  0x42   : > { %3100 = vmatmul.msk.bf16.gmra.mxu0 %vm489_vm2, %v3651_v10 }
  0x52   : > { %3101 = vmatmul.msk.bf16.gmra.mxu0 %vm489_vm2, %v3652_v11 }
  0x62   : > { %3102 = vmatmul.msk.bf16.gmra.mxu0 %vm489_vm2, %v3653_v12 }
  0x72   : > { %3103 = vmatmul.msk.bf16.gmra.mxu0 %vm489_vm2, %v3654_v13 }
  0x82   : > { %3104 = vmatmul.msk.bf16.gmra.mxu0 %vm489_vm2, %v3655_v14 }
  0x92   : > { %3105 = vmatmul.msk.bf16.gmra.mxu0 %vm489_vm2, %v3656_v15 }
  0x9f   : > { %v554_v17 = vpop.f32.mrf.mxu0 }
  0xa0   : > { %v555_v29 = vadd.f32 %v4262_v28, %v554_v17 }
  0xa2   : > { %3106 = vmatmul.msk.bf16.gmra.mxu0 %vm489_vm2, %v3657_v16  ;;  %v634_v33 = vmax.f32 %v555_v29, 0.0 }
  0xa7   : > { %v4245_v18 = vpop.f32.mrf.mxu0 }
  0xa8   : > { %v557_v16 = vadd.f32 %v4262_v28, %v4245_v18 }
  0xaf   : > { %v559_v20 = vpop.f32.mrf.mxu0 }
  0xb0   : > { %v560_v37 = vadd.f32 %v4262_v28, %v559_v20 }
  0xb2   : > { %3107 = vmatmul.msk.bf16.gmra.mxu0 %vm489_vm2, %v3658_v19  ;;  %v636_v41 = vmax.f32 %v560_v37, 0.0 }
  0xb7   : > { %v4249_v21 = vpop.f32.mrf.mxu0 }
  0xbf   : > { %v564_v23 = vpop.f32.mrf.mxu0 }
  0xc0   : > { %v565_v45 = vadd.f32 %v4262_v28, %v564_v23 }
  0xc2   : > { %3108 = vmatmul.msk.bf16.gmra.mxu0 %vm489_vm2, %v3659_v22  ;;  %v638_v49 = vmax.f32 %v565_v45, 0.0 }
  0xc7   : > { %v4253_v24 = vpop.f32.mrf.mxu0 }
  0xc8   : > { %v567_v6 = vadd.f32 %v4262_v28, %v4253_v24  ;;  %v3700_v24 = vld [vmem:[%s4948_s5 + $0xa8] sm:$0xff] }
  0xcf   : > { %v569_v26 = vpop.f32.mrf.mxu0 }
  0xd0   : > { %v570_v53 = vadd.f32 %v4262_v28, %v569_v26 }
  0xd2   : > { %3109 = vmatmul.msk.bf16.gmra.mxu0 %vm489_vm2, %v3660_v25  ;;  %v640_v57 = vmax.f32 %v570_v53, 0.0  ;;  %v635_v25 = vmax.f32 %v557_v16, 0.0 }
  0xd7   : > { %v4257_v27 = vpop.f32.mrf.mxu0 }
  0xdf   : > { %v574_v31 = vpop.f32.mrf.mxu0 }
  0xe0   : > { %v575_v32 = vadd.f32 %v4262_v28, %v574_v31 }
  0xe2   : > { %v642_v34 = vmax.f32 %v575_v32, 0.0  ;;  %3110 = vmatmul.msk.bf16.gmra.mxu0 %vm489_vm2, %v3661_v30 }
  0xe4   : > { %v4268_v35 = vmax.f32 %v634_v33, %v642_v34 }
  0xe7   : > { %v576_v36 = vpop.f32.mrf.mxu0 }
  0xe8   : > { %v577_v14 = vadd.f32 %v4262_v28, %v576_v36 }
  0xea   : > { %v643_v22 = vmax.f32 %v577_v14, 0.0  ;;  %v3676_v14 = vld [vmem:[%s4948_s5 + $0x28] sm:$0xff] }
  0xec   : > { %v667_v30 = vmax.f32 %v635_v25, %v643_v22 }
  0xef   : > { %v579_v39 = vpop.f32.mrf.mxu0 }
  0xf0   : > { %v580_v40 = vadd.f32 %v4262_v28, %v579_v39 }
  0xf2   : > { %v644_v42 = vmax.f32 %v580_v40, 0.0  ;;  %3111 = vmatmul.msk.bf16.gmra.mxu0 %vm489_vm2, %v3662_v38  ;;  %v562_v40 = vadd.f32 %v4262_v28, %v4249_v21 }
  0xf4   : > { %v4274_v43 = vmax.f32 %v636_v41, %v644_v42 }
  0xf7   : > { %v581_v44 = vpop.f32.mrf.mxu0 }
  0xff   : > { %v584_v47 = vpop.f32.mrf.mxu0 }
 0x100   : > { %v585_v48 = vadd.f32 %v4262_v28, %v584_v47 }
 0x102   : > { %v646_v50 = vmax.f32 %v585_v48, 0.0  ;;  %3112 = vmatmul.msk.bf16.gmra.mxu0 %vm489_vm2, %v3663_v46  ;;  %v637_v48 = vmax.f32 %v562_v40, 0.0 }
 0x104   : > { %v4280_v51 = vmax.f32 %v638_v49, %v646_v50 }
 0x107   : > { %v4282_v52 = vpop.f32.mrf.mxu0 }
 0x10f   : > { %v589_v55 = vpop.f32.mrf.mxu0 }
 0x110   : > { %v590_v56 = vadd.f32 %v4262_v28, %v589_v55 }
 0x112   : > { %v648_v58 = vmax.f32 %v590_v56, 0.0  ;;  %3113 = vmatmul.msk.bf16.gmra.mxu0 %vm489_vm2, %v3664_v54 }
 0x114   : > { %v4288_v59 = vmax.f32 %v640_v57, %v648_v58 }
 0x117   : > { %v4290_v60 = vpop.f32.mrf.mxu0 }
 0x11f   : > { %v594_v61 = vpop.f32.mrf.mxu0 }
 0x120   : > { %v595_v9 = vadd.f32 %v4262_v28, %v594_v61 }
 0x122   : > { %v650_v12 = vmax.f32 %v595_v9, 0.0 }
 0x127   : > { %v596_v62 = vpop.f32.mrf.mxu0 }
 0x128   : > { %v597_v17 = vadd.f32 %v4262_v28, %v596_v62  ;;  %v3678_v62 = vld [vmem:[%s4948_s5 + $0x38] sm:$0xff] }
 0x129   : > { %1161 = vmatpush.bf16.msra.mxu3 %v3678_v62  ;;  %v3737_v62 = vld [vmem:[%s4948_s5 + $0x190] sm:$0xff] }
 0x12a   : > { %v651_v26 = vmax.f32 %v597_v17, 0.0 }
 0x12d   : > { %1162 = vmatpush.bf16.msra.mxu3 %v3677_v3 }
 0x12f   : > { %v599_v63 = vpop.f32.mrf.mxu0 }
 0x130   : > { %v600_v32 = vadd.f32 %v4262_v28, %v599_v63  ;;  %v3702_v63 = vld [vmem:[%s4948_s5 + $0xb8] sm:$0xff] }
 0x131   : > { %1412 = vmatpush.bf16.msrb.mxu1 %v3702_v63  ;;  %1163 = vmatpush.bf16.msra.mxu3 %v3676_v14  ;;  %v4444_v63 = vld [vmem:[%s4947_s4] ss:$0 sm:$0xff] }
 0x132   : > { %v652_v37 = vmax.f32 %v600_v32, 0.0  ;;  %v572_v32 = vadd.f32 %v4262_v28, %v4257_v27  ;;  %v3683_v27 = vld [vmem:[%s4948_s5 + $0x60] sm:$0xff] }
 0x135   : > { %1413 = vmatpush.bf16.msrb.mxu1 %v3701_v5 }
 0x137   : > { %v601_v0 = vpop.f32.mrf.mxu0 }
 0x138   : > { %v602_v41 = vadd.f32 %v4262_v28, %v601_v0  ;;  %v587_v0 = vadd.f32 %v4262_v28, %v4282_v52 }
 0x139   : > { %1414 = vmatpush.bf16.msrb.mxu1 %v3700_v24 }
 0x13a   : > { %v653_v49 = vmax.f32 %v602_v41, 0.0 }
 0x13f   : > { %v604_v1 = vpop.f32.mrf.mxu0 }
 0x140   : > { %v605_v55 = vadd.f32 %v4262_v28, %v604_v1 }
 0x142   : > { %v654_v58 = vmax.f32 %v605_v55, 0.0  ;;  %v3696_v55 = vld [vmem:[%s4948_s5 + $0x88] sm:$0xff] }
 0x147   : > { %v4298_v4 = vpop.f32.mrf.mxu0 }
 0x148   : > { %v607_v52 = vadd.f32 %v4262_v28, %v4298_v4 }
 0x14a   : > { %v655_v4 = vmax.f32 %v607_v52, 0.0 }
 0x14f   : > { %v4306_v7 = vpop.f32.mrf.mxu0 }
 0x157   : > { %v4308_v8 = vpop.f32.mrf.mxu0 }
 0x15f   : > { %v614_v10 = vpop.f32.mrf.mxu0 }
 0x160   : > { %v615_v11 = vadd.f32 %v4262_v28, %v614_v10 }
 0x162   : > { %v658_v13 = vmax.f32 %v615_v11, 0.0  ;;  %v647_v11 = vmax.f32 %v587_v0, 0.0 }
 0x164   : > { %v674_v15 = vmax.f32 %v650_v12, %v658_v13  ;;  %v3684_v13 = vld [vmem:[%s4948_s5 + $0x68] sm:$0xff] }
 0x166   : > { %v682_v19 = vmax.f32 %v4268_v35, %v674_v15  ;;  %v582_v35 = vadd.f32 %v4262_v28, %v581_v44 }
 0x167   : > { %v616_v20 = vpop.f32.mrf.mxu0 }
 0x168   : > { %v617_v23 = vadd.f32 %v4262_v28, %v616_v20  ;;  %v645_v46 = vmax.f32 %v582_v35, 0.0 }
 0x16a   : > { %v659_v29 = vmax.f32 %v617_v23, 0.0  ;;  %v669_v53 = vmax.f32 %v637_v48, %v645_v46  ;;  %v3674_v46 = vld [vmem:[%s4948_s5 + $0x18] sm:$0xff]  ;;  %v3681_v48 = vld [vmem:[%s4948_s5 + $0x50] sm:$0xff] }
 0x16c   : > { %v675_v31 = vmax.f32 %v651_v26, %v659_v29 }
 0x16e   : > { %v683_v33 = vmax.f32 %v667_v30, %v675_v31  ;;  %v592_v30 = vadd.f32 %v4262_v28, %v4290_v60 }
 0x16f   : > { %v619_v34 = vpop.f32.mrf.mxu0 }
 0x170   : > { %v620_v18 = vadd.f32 %v4262_v28, %v619_v34  ;;  %v690_v36 = vpack.c.bf16 %v683_v33, %v682_v19  ;;  %v610_v19 = vadd.f32 %v4262_v28, %v4306_v7  ;;  %v612_v33 = vadd.f32 %v4262_v28, %v4308_v8  ;;  %v3682_v8 = vld [vmem:[%s4948_s5 + $0x58] sm:$0xff] }
 0x172   : > { %v660_v38 = vmax.f32 %v620_v18, 0.0  ;;  %3130 = vmatmul.msk.bf16.vlgmr.msra.gmra.mxu1 %vm730_vm3, %v690_v36  ;;  %v656_v26 = vmax.f32 %v610_v19, 0.0  ;;  %v649_v18 = vmax.f32 %v592_v30, 0.0 }
 0x174   : > { %v676_v39 = vmax.f32 %v652_v37, %v660_v38  ;;  %v641_v37 = vmax.f32 %v572_v32, 0.0  ;;  %v657_v38 = vmax.f32 %v612_v33, 0.0 }
 0x176   : > { %v684_v42 = vmax.f32 %v4274_v43, %v676_v39  ;;  %v3686_v43 = vld [vmem:[%s4948_s5 + $0x78] sm:$0xff]  ;;  %v673_v39 = vmax.f32 %v641_v37, %v649_v18 }
 0x177   : > { %v621_v45 = vpop.f32.mrf.mxu0  ;;  %964 = vmatpush.bf16.msra.mxu2 %v3686_v43  ;;  %v3738_v43 = vld [vmem:[%s4948_s5 + $0x198] sm:$0xff] }
 0x178   : > { %v622_v47 = vadd.f32 %v4262_v28, %v621_v45  ;;  %v3698_v45 = vld [vmem:[%s4948_s5 + $0x98] sm:$0xff] }
 0x17a   : > { %v661_v50 = vmax.f32 %v622_v47, 0.0  ;;  %v3742_v47 = vld [vmem:[%s4948_s5 + $0x1b8] sm:$0xff] }
 0x17b   : > { %965 = vmatpush.bf16.msra.mxu2 %v3685_v2  ;;  %2380 = vmatpush.bf16.msrb.mxu0 %v3742_v47  ;;  %v3736_v2 = vld [vmem:[%s4948_s5 + $0x188] sm:$0xff] }
 0x17c   : > { %v677_v54 = vmax.f32 %v653_v49, %v661_v50  ;;  %v3697_v49 = vld [vmem:[%s4948_s5 + $0x90] sm:$0xff] }
 0x17d   : > { %v3673_v50 = vld [vmem:[%s4948_s5 + $0x10] sm:$0xff] }
 0x17e   : > { %v685_v44 = vmax.f32 %v669_v53, %v677_v54  ;;  %v3741_v53 = vld [vmem:[%s4948_s5 + $0x1b0] sm:$0xff]  ;;  %v3680_v54 = vld [vmem:[%s4948_s5 + $0x48] sm:$0xff] }
 0x17f   : > { %v624_v56 = vpop.f32.mrf.mxu0  ;;  %966 = vmatpush.bf16.msra.mxu2 %v3684_v13  ;;  %2381 = vmatpush.bf16.msrb.mxu0 %v3741_v53 }
 0x180   : > { %v625_v57 = vadd.f32 %v4262_v28, %v624_v56  ;;  %v691_v21 = vpack.c.bf16 %v685_v44, %v684_v42  ;;  %v4107_v42 = vmov 0   ;;  %v3672_v44 = vld [vmem:[%s4948_s5 + $0x8] sm:$0xff] }
 0x181   : > { %791 = vst [vmem:[#allocation2 + $0xc] sm:$0xf] %v4107_v42  ;;  %v3740_v56 = vld [vmem:[%s4948_s5 + $0x1a8] sm:$0xff] }
 0x182   : > { %v662_v61 = vmax.f32 %v625_v57, 0.0  ;;  %3131 = vmatmul.msk.bf16.gmra.mxu1 %vm730_vm3, %v691_v21  ;;  %788 = vst [vmem:[#allocation2] sm:$0xf] %v4107_v42  ;;  %v3679_v57 = vld [vmem:[%s4948_s5 + $0x40] sm:$0xff] }
 0x183   : > { %967 = vmatpush.bf16.msra.mxu2 %v3683_v27  ;;  %789 = vst [vmem:[#allocation2 + $0x4] sm:$0xf] %v4107_v42  ;;  %2382 = vmatpush.bf16.msrb.mxu0 %v3740_v56  ;;  %v3695_v21 = vld [vmem:[%s4948_s5 + $0x80] sm:$0xff] }
 0x184   : > { %v678_v1 = vmax.f32 %v654_v58, %v662_v61  ;;  %790 = vst [vmem:[#allocation2 + $0x8] sm:$0xf] %v4107_v42  ;;  %v3671_v58 = vld [vmem:[%s4948_s5] sm:$0xff] }
 0x185   : > { %792 = vst [vmem:[#allocation2 + $0x10] sm:$0xf] %v4107_v42  ;;  %v3739_v61 = vld [vmem:[%s4948_s5 + $0x1a0] sm:$0xff] }
 0x186   : > { %v686_v9 = vmax.f32 %v4280_v51, %v678_v1  ;;  %v639_v51 = vmax.f32 %v567_v6, 0.0  ;;  %793 = vst [vmem:[#allocation2 + $0x14] sm:$0xf] %v4107_v42 }
 0x187   : > { %v626_v10 = vpop.f32.mrf.mxu0  ;;  %968 = vmatpush.bf16.msra.mxu2 %v3682_v8  ;;  %794 = vst [vmem:[#allocation2 + $0x18] sm:$0xf] %v4107_v42  ;;  %2383 = vmatpush.bf16.msrb.mxu0 %v3739_v61 }
 0x188   : > { %v627_v12 = vadd.f32 %v4262_v28, %v626_v10  ;;  %v671_v16 = vmax.f32 %v639_v51, %v647_v11  ;;  %795 = vst [vmem:[#allocation2 + $0x1c] sm:$0xf] %v4107_v42 }
 0x189   : > { %796 = vst [vmem:[#allocation2 + $0x20] sm:$0xf] %v4107_v42  ;;  %v818_v0 = vld [vmem:[#allocation2] sm:$0x8] }
 0x18a   : > { %v663_v15 = vmax.f32 %v627_v12, 0.0  ;;  %797 = vst [vmem:[#allocation2 + $0x24] sm:$0xf] %v4107_v42  ;;  %v819_v1 = vld [vmem:[#allocation2 + $0x4] sm:$0xf]  ;;  %v1014_v6 = vunpack.c.l.b16 %v818_v0 }
 0x18b   : > { %969 = vmatpush.bf16.msra.mxu2 %v3681_v48  ;;  %798 = vst [vmem:[#allocation2 + $0x28] sm:$0xf] %v4107_v42  ;;  %2384 = vmatpush.bf16.msrb.mxu0 %v3738_v43  ;;  %v884_v5 = vunpack.c.l.b16 %v819_v1  ;;  %v3687_v12 = vld [vmem:[#allocation2 + $0x4] sm:$0xff] }
 0x18c   : > { %v679_v17 = vmax.f32 %v655_v4, %v663_v15  ;;  %799 = vst [vmem:[#allocation2 + $0x2c] sm:$0xf] %v4107_v42  ;;  %v1291_v4 = vshll.u32 %v3687_v12, 16 }
 0x18d   : > { %800 = vst [vmem:[#allocation2 + $0x30] sm:$0xf] %v4107_v42  ;;  %v1015_v11 = vpack.c.b16 %v884_v5, %v1014_v6 }
 0x18e   : > { %v687_v20 = vmax.f32 %v671_v16, %v679_v17  ;;  %801 = vst [vmem:[#allocation2 + $0x34] sm:$0xf] %v4107_v42 }
 0x18f   : > { %v629_v22 = vpop.f32.mrf.mxu0  ;;  %970 = vmatpush.bf16.msra.mxu2 %v3680_v54  ;;  %802 = vst [vmem:[#allocation2 + $0x38] sm:$0xf] %v4107_v42  ;;  %2385 = vmatpush.bf16.msrb.mxu0 %v3737_v62  ;;  %v1026_v24 = vshrl.u32 %v1015_v11, 16  ;;  %v1029_v51 = vshll.u32 %v1015_v11, 16 }
 0x190   : > { %v630_v23 = vadd.f32 %v4262_v28, %v629_v22  ;;  %v692_v25 = vpack.c.bf16 %v687_v20, %v686_v9  ;;  %803 = vst [vmem:[#allocation2 + $0x3c] sm:$0xf] %v4107_v42  ;;  %v3735_v9 = vld [vmem:[%s4948_s5 + $0x180] sm:$0xff]  ;;  %v1289_v20 = vshrl.u32 %v3687_v12, 16  ;;  %v1293_v22 = vrot.slane %v1291_v4, 1 }
 0x191   : > { %804 = vst [vmem:[#allocation2 + $0x40] sm:$0xf] %v4107_v42  ;;  %v1028_v17 = vrot.slane %v1026_v24, 3  ;;  %v1031_v19 = vrot.slane %v1029_v51, 4 }
 0x192   : > { %v664_v29 = vmax.f32 %v630_v23, 0.0  ;;  %3132 = vmatmul.msk.bf16.gmra.mxu1 %vm730_vm3, %v692_v25  ;;  %805 = vst [vmem:[#allocation2 + $0x44] sm:$0xf] %v4107_v42 }
 0x193   : > { %971 = vmatpush.bf16.msra.mxu2 %v3679_v57  ;;  %806 = vst [vmem:[#allocation2 + $0x48] sm:$0xf] %v4107_v42  ;;  %2386 = vmatpush.bf16.msrb.mxu0 %v3736_v2  ;;  %v1032_v33 = vor.u32 %v1031_v19, %v1028_v17 }
 0x194   : > { %v680_v31 = vmax.f32 %v656_v26, %v664_v29  ;;  %807 = vst [vmem:[#allocation2 + $0x4c] sm:$0xf] %v4107_v42 }
 0x195   : > { %808 = vst [vmem:[#allocation2 + $0x50] sm:$0xf] %v4107_v42 }
 0x196   : > { %v688_v7 = vmax.f32 %v4288_v59, %v680_v31  ;;  %v3699_v59 = vld [vmem:[%s4948_s5 + $0xa0] sm:$0xff]  ;;  %809 = vst [vmem:[#allocation2 + $0x54] sm:$0xf] %v4107_v42 }
 0x197   : > { %v631_v34 = vpop.f32.mrf.mxu0  ;;  %1415 = vmatpush.bf16.msrb.mxu1 %v3699_v59  ;;  %2387 = vmatpush.bf16.msrb.mxu0 %v3735_v9 }
 0x198   : > { %v632_v36 = vadd.f32 %v4262_v28, %v631_v34  ;;  %v3675_v28 = vld [vmem:[%s4948_s5 + $0x20] sm:$0xff] }
 0x199   : > { %1164 = vmatpush.bf16.msra.mxu3 %v3675_v28 }
 0x19a   : > { %v665_v35 = vmax.f32 %v632_v36, 0.0 }
 0x19b   : > { %1416 = vmatpush.bf16.msrb.mxu1 %v3698_v45 }
 0x19c   : > { %v681_v40 = vmax.f32 %v657_v38, %v665_v35 }
 0x19d   : > { %1165 = vmatpush.bf16.msra.mxu3 %v3674_v46 }
 0x19e   : > { %v689_v41 = vmax.f32 %v673_v39, %v681_v40  ;;  %v2167_v39 = vld [vmem:[#allocation2 + $0x10] sm:$0x8] }
 0x19f   : > { %1417 = vmatpush.bf16.msrb.mxu1 %v3697_v49  ;;  %v2218_v28 = vunpack.c.l.b16 %v2167_v39 }
 0x1a0   : > { %v693_v60 = vpack.c.bf16 %v689_v41, %v688_v7  ;;  %v1294_v7 = vor.u32 %v1293_v22, %v1289_v20 }
 0x1a1   : > { %1166 = vmatpush.bf16.msra.mxu3 %v3673_v50 }
 0x1a2   : > { %3133 = vmatmul.msk.bf16.gmra.mxu1 %vm730_vm3, %v693_v60 }
 0x1a3   : > { %1418 = vmatpush.bf16.msrb.mxu1 %v3696_v55 }
 0x1a5   : > { %1167 = vmatpush.bf16.msra.mxu3 %v3672_v44 }
 0x1a7   : > { %1419 = vmatpush.bf16.msrb.mxu1 %v3695_v21 }
 0x1a9   : > { %1168 = vmatpush.bf16.msra.mxu3 %v3671_v58 }
 0x1ef   : > { %v752_v3 = vpop.f32.mrf.mxu1 }
 0x1f0   : > { %v753_v52 = vadd.f32 %v4444_v63, %v752_v3 }
 0x1f2   : > { %v772_v10 = vmax.f32 %v753_v52, 0.0 }
 0x1f4   : > { %v780_v13 = vpack.c.bf16 %v772_v10, %v772_v10 }
 0x1f6   : > { %810 = vst [vmem:[#allocation2 + $0xc] sm:$0xf] %v780_v13 }
 0x1f7   : > { %v754_v14 = vpop.f32.mrf.mxu1 }
 0x1f8   : > { %v755_v15 = vadd.f32 %v4444_v63, %v754_v14 }
 0x1fa   : > { %v773_v16 = vmax.f32 %v755_v15, 0.0 }
 0x1fc   : > { %v781_v23 = vpack.c.bf16 %v773_v16, %v773_v16 }
 0x1fd   : > { %v3851_v25 = vld [vmem:[#allocation2 + $0x8] sm:$0xff]  }
 0x1fe   : > { %v3688_v26 = vld [vmem:[#allocation2 + $0xc] sm:$0xff]  ;;  %811 = vst [vmem:[#allocation2 + $0x14] sm:$0xf] %v781_v23  ;;  %v3769_v29 = vunpack.c.l.b16 %v3851_v25  ;;  %v1034_v30 = vshrl.u32 %v3851_v25, 16  ;;  %v1037_v31 = vshll.u32 %v3851_v25, 16 }
 0x1ff   : > { %v757_v32 = vpop.f32.mrf.mxu1  ;;  %v1296_v34 = vshll.u32 %v3688_v26, 16  ;;  %v3988_v9 = vld [vmem:[#allocation2 + $0xc] sm:$0xff]  }
 0x200   : > { %v758_v18 = vadd.f32 %v4444_v63, %v757_v32  ;;  %v900_v36 = vpack.c.b16 %v3769_v29, %v884_v5  ;;  %v1036_v37 = vrot.slane %v1034_v30, 3  ;;  %v1039_v38 = vrot.slane %v1037_v31, 4 }
 0x201   : > { %v1298_v35 = vrot.slane %v1296_v34, 1  ;;  %v1300_v5 = vshrl.u32 %v3688_v26, 16 }
 0x202   : > { %v774_v40 = vmax.f32 %v758_v18, 0.0  ;;  %972 = vmatmul.bf16.vlgmr.msra.gmra.mxu2 %v900_v36  ;;  %v1040_v41 = vor.u32 %v1039_v38, %v1036_v37 }
 0x203   : > { %v1299_v60 = vsel %vm1287_vm4, %v1294_v7, %v1298_v35  ;;  %v1302_v13 = vor.u32 %v1300_v5, %v1298_v35 }
 0x204   : > { %v782_v27 = vpack.c.bf16 %v774_v40, %v774_v40  ;;  %v1041_v59 = vsel %vm1024_vm5, %v1032_v33, %v1040_v41  ;;  %1420 = vmatmul.bf16.vlgmr.msrb.gmra.mxu1 %v1299_v60 }
 0x205   : > { %1169 = vmatmul.bf16.vlgmr.msra.gmra.mxu3 %v1041_v59  ;;  %v4457_v8 = vld [vmem:[#allocation2 + $0x10] sm:$0xff]  }
 0x206   : > { %v2168_v42 = vld [vmem:[#allocation2 + $0x14] sm:$0xf]  ;;  %812 = vst [vmem:[#allocation2 + $0x1c] sm:$0xf] %v782_v27  ;;  %v1043_v49 = vshrl.u32 %v4457_v8, 16  ;;  %v1046_v50 = vshll.u32 %v4457_v8, 16 }
 0x207   : > { %v2219_v45 = vunpack.c.l.b16 %v2168_v42  ;;  %v759_v46 = vpop.f32.mrf.mxu1  ;;  %v3689_v47 = vld [vmem:[#allocation2 + $0x14] sm:$0xff] }
 0x208   : > { %v760_v48 = vadd.f32 %v4444_v63, %v759_v46  ;;  %v1304_v56 = vshll.u32 %v3689_v47, 16  ;;  %v1045_v21 = vrot.slane %v1043_v49, 3  ;;  %v1048_v58 = vrot.slane %v1046_v50, 4  ;;  %v3990_v38 = vld [vmem:[#allocation2 + $0x14] sm:$0xff]  }
 0x209   : > { %v2235_v53 = vpack.c.b16 %v2219_v45, %v2218_v28  ;;  %v1308_v18 = vshrl.u32 %v3689_v47, 16 }
 0x20a   : > { %v775_v54 = vmax.f32 %v760_v48, 0.0  ;;  %v1306_v6 = vrot.slane %v1304_v56, 1  ;;  %v4463_v10 = vor.u32 %v1048_v58, %v1045_v21 }
 0x20b   : > { %v2245_v55 = vshrl.u32 %v2235_v53, 16  ;;  %v2248_v44 = vshll.u32 %v2235_v53, 16 }
 0x20c   : > { %v783_v57 = vpack.c.bf16 %v775_v54, %v775_v54  ;;  %v1307_v15 = vsel %vm1287_vm4, %v1302_v13, %v1306_v6  ;;  %v1050_v17 = vsel %vm1024_vm5, %v1040_v41, %v4463_v10  ;;  %v1310_v39 = vor.u32 %v1308_v18, %v1306_v6  ;;  %v3710_v13 = vld [vmem:[%s4948_s5 + $0xf8] sm:$0xff] }
 0x20d   : > { %v3895_v61 = vld [vmem:[#allocation2 + $0x18] sm:$0xff]   ;;  %v2247_v43 = vrot.slane %v2245_v55, 3  ;;  %v2250_v62 = vrot.slane %v2248_v44, 4  ;;  %1690 = vmatpush.bf16.msrb.mxu2 %v3710_v13 }
 0x20e   : > { %813 = vst [vmem:[#allocation2 + $0x24] sm:$0xf] %v783_v57  ;;  %v2253_v0 = vshrl.u32 %v3895_v61, 16  ;;  %v2256_v1 = vshll.u32 %v3895_v61, 16  ;;  %v3825_v2 = vunpack.c.l.b16 %v3895_v61  ;;  %v3690_v23 = vld [vmem:[#allocation2 + $0x1c] sm:$0xff] }
 0x20f   : > { %v762_v3 = vpop.f32.mrf.mxu1  ;;  %v2251_v24 = vor.u32 %v2250_v62, %v2247_v43  ;;  %v1312_v31 = vshll.u32 %v3690_v23, 16  ;;  %v1316_v44 = vshrl.u32 %v3690_v23, 16  ;;  %v3992_v57 = vld [vmem:[#allocation2 + $0x1c] sm:$0xff]  }
 0x210   : > { %v763_v52 = vadd.f32 %v4444_v63, %v762_v3  ;;  %v2255_v11 = vrot.slane %v2253_v0, 3  ;;  %v2258_v12 = vrot.slane %v2256_v1, 4  ;;  %v4465_v4 = vpack.c.b16 %v3825_v2, %v2219_v45 }
 0x211   : > { %v1314_v36 = vrot.slane %v1312_v31, 1  ;;  %v3716_v31 = vld [vmem:[%s4948_s5 + $0x128] sm:$0xff] }
 0x212   : > { %v776_v14 = vmax.f32 %v763_v52, 0.0  ;;  %977 = vmatmul.bf16.gmra.mxu2 %v3988_v9  ;;  %v2259_v51 = vor.u32 %v2258_v12, %v2255_v11 }
 0x213   : > { %v1315_v41 = vsel %vm1287_vm4, %v1310_v39, %v1314_v36  ;;  %v1318_v58 = vor.u32 %v1316_v44, %v1314_v36  ;;  %v3715_v39 = vld [vmem:[%s4948_s5 + $0x120] sm:$0xff] }
 0x214   : > { %v784_v16 = vpack.c.bf16 %v776_v14, %v776_v14  ;;  %1425 = vmatmul.bf16.gmra.mxu1 %v1307_v15  ;;  %v2260_v19 = vsel %vm1024_vm5, %v2251_v24, %v2259_v51  ;;  %v4476_v27 = vsel %vm1024_vm5, %v4463_v10, %v2259_v51 }
 0x215   : > { %1174 = vmatmul.bf16.gmra.mxu3 %v1050_v17  ;;  %2388 = vmatmul.bf16.vlgmr.msrb.gmra.mxu0 %v2260_v19  ;;  %v3896_v20 = vld [vmem:[#allocation2 + $0x20] sm:$0xff]   ;;  %v3709_v17 = vld [vmem:[%s4948_s5 + $0xf0] sm:$0xff] }
 0x216   : > { %814 = vst [vmem:[#allocation2 + $0x2c] sm:$0xf] %v784_v16  ;;  %v2262_v26 = vshrl.u32 %v3896_v20, 16  ;;  %v2265_v29 = vshll.u32 %v3896_v20, 16  ;;  %v3691_v45 = vld [vmem:[#allocation2 + $0x24] sm:$0xff]  ;;  %v3718_v16 = vld [vmem:[%s4948_s5 + $0x138] sm:$0xff]  ;;  %1691 = vmatpush.bf16.msrb.mxu2 %v3709_v17 }
 0x217   : > { %v764_v22 = vpop.f32.mrf.mxu1  ;;  %v1320_v50 = vshll.u32 %v3691_v45, 16  ;;  %v1324_v6 = vshrl.u32 %v3691_v45, 16  ;;  %v3994_v9 = vld [vmem:[#allocation2 + $0x24] sm:$0xff]   ;;  %v3733_v19 = vld [vmem:[%s4948_s5 + $0x170] sm:$0xff]  ;;  %1836 = vmatpush.bf16.msrb.mxu3 %v3718_v16  ;;  %v3714_v45 = vld [vmem:[%s4948_s5 + $0x118] sm:$0xff] }
 0x218   : > { %v765_v25 = vadd.f32 %v4444_v63, %v764_v22  ;;  %v2264_v33 = vrot.slane %v2262_v26, 3  ;;  %v2267_v7 = vrot.slane %v2265_v29, 4  ;;  %v3717_v22 = vld [vmem:[%s4948_s5 + $0x130] sm:$0xff]  ;;  %v3708_v26 = vld [vmem:[%s4948_s5 + $0xe8] sm:$0xff] }
 0x219   : > { %v1322_v56 = vrot.slane %v1320_v50, 1  ;;  %v3732_v29 = vld [vmem:[%s4948_s5 + $0x168] sm:$0xff] }
 0x21a   : > { %v777_v30 = vmax.f32 %v765_v25, 0.0  ;;  %v2268_v35 = vor.u32 %v2267_v7, %v2264_v33  ;;  %1692 = vmatpush.bf16.msrb.mxu2 %v3708_v26  ;;  %v3707_v7 = vld [vmem:[%s4948_s5 + $0xe0] sm:$0xff] }
 0x21b   : > { %v1323_v61 = vsel %vm1287_vm4, %v1318_v58, %v1322_v56  ;;  %v1326_v12 = vor.u32 %v1324_v6, %v1322_v56  ;;  %1837 = vmatpush.bf16.msrb.mxu3 %v3717_v22  ;;  %v3712_v56 = vld [vmem:[%s4948_s5 + $0x108] sm:$0xff]  ;;  %v834_v58 = vld [vmem:[#allocation2 + $0x40] sm:$0xf] }
 0x21c   : > { %v785_v32 = vpack.c.bf16 %v777_v30, %v777_v30  ;;  %v4479_v59 = vsel %vm1024_vm5, %v2259_v51, %v2268_v35  ;;  %v3734_v51 = vld [vmem:[%s4948_s5 + $0x178] sm:$0xff] }
 0x21d   : > { %v3897_v28 = vld [vmem:[#allocation2 + $0x28] sm:$0xff]   ;;  %2102 = vmatpush.bf16.msra.mxu1 %v3734_v51 }
 0x21e   : > { %815 = vst [vmem:[#allocation2 + $0x34] sm:$0xf] %v785_v32  ;;  %v2271_v47 = vshrl.u32 %v3897_v28, 16  ;;  %v2274_v48 = vshll.u32 %v3897_v28, 16  ;;  %v3692_v62 = vld [vmem:[#allocation2 + $0x2c] sm:$0xff]  ;;  %1693 = vmatpush.bf16.msrb.mxu2 %v3707_v7  ;;  %v3730_v28 = vld [vmem:[%s4948_s5 + $0x158] sm:$0xff] }
 0x21f   : > { %v767_v34 = vpop.f32.mrf.mxu1  ;;  %v1328_v2 = vshll.u32 %v3692_v62, 16  ;;  %1838 = vmatpush.bf16.msrb.mxu3 %v3716_v31  ;;  %v3996_v36 = vld [vmem:[#allocation2 + $0x2c] sm:$0xff]  }
 0x220   : > { %v768_v37 = vadd.f32 %v4444_v63, %v767_v34  ;;  %v2273_v54 = vrot.slane %v2271_v47, 3  ;;  %v2276_v55 = vrot.slane %v2274_v48, 4  ;;  %v1332_v34 = vshrl.u32 %v3692_v62, 16  ;;  %v3729_v47 = vld [vmem:[%s4948_s5 + $0x150] sm:$0xff] }
 0x221   : > { %v1330_v52 = vrot.slane %v1328_v2, 1  ;;  %2103 = vmatpush.bf16.msra.mxu1 %v3733_v19 }
 0x222   : > { %v778_v40 = vmax.f32 %v768_v37, 0.0  ;;  %982 = vmatmul.bf16.gmra.mxu2 %v3990_v38  ;;  %v2277_v21 = vor.u32 %v2276_v55, %v2273_v54  ;;  %v3731_v38 = vld [vmem:[%s4948_s5 + $0x160] sm:$0xff]  ;;  %v3704_v54 = vld [vmem:[%s4948_s5 + $0xc8] sm:$0xff] }
 0x223   : > { %v1331_v14 = vsel %vm1287_vm4, %v1326_v12, %v1330_v52  ;;  %1839 = vmatpush.bf16.msrb.mxu3 %v3715_v39  ;;  %v3728_v55 = vld [vmem:[%s4948_s5 + $0x148] sm:$0xff] }
 0x224   : > { %v786_v60 = vpack.c.bf16 %v778_v40, %v778_v40  ;;  %1430 = vmatmul.bf16.gmra.mxu1 %v1315_v41  ;;  %v4486_v43 = vsel %vm1024_vm5, %v2268_v35, %v2277_v21  ;;  %v1334_v35 = vor.u32 %v1332_v34, %v1330_v52  ;;  %v3706_v40 = vld [vmem:[%s4948_s5 + $0xd8] sm:$0xff]  ;;  %v3711_v52 = vld [vmem:[%s4948_s5 + $0x100] sm:$0xff] }
 0x225   : > { %1179 = vmatmul.bf16.gmra.mxu3 %v4476_v27  ;;  %2393 = vmatmul.bf16.gmra.mxu0 %v4479_v59  ;;  %v4513_v20 = vld [vmem:[#allocation2 + $0x34] sm:$0xff] }
 0x226   : > { %816 = vst [vmem:[#allocation2 + $0x3c] sm:$0xf] %v786_v60  ;;  %v1336_v30 = vshll.u32 %v4513_v20, 16  ;;  %2104 = vmatpush.bf16.msra.mxu1 %v3732_v29  ;;  %1694 = vmatpush.bf16.msrb.mxu2 %v3706_v40 }
 0x227   : > { %v769_v42 = vpop.f32.mrf.mxu1  ;;  %1840 = vmatpush.bf16.msrb.mxu3 %v3714_v45  ;;  %v3719_v45 = vld [vmem:[#allocation2 + $0xc] sm:$0xff] }
 0x228   : > { %v770_v46 = vadd.f32 %v4444_v63, %v769_v42  ;;  %v3898_v63 = vld [vmem:[#allocation2 + $0x30] sm:$0xff]   ;;  %v1338_v18 = vrot.slane %v1336_v30, 1 }
 0x229   : > { %v2280_v0 = vshrl.u32 %v3898_v63, 16  ;;  %v2283_v1 = vshll.u32 %v3898_v63, 16  ;;  %v1340_v63 = vshrl.u32 %v4513_v20, 16 }
 0x22a   : > { %v779_v49 = vmax.f32 %v770_v46, 0.0  ;;  %2105 = vmatpush.bf16.msra.mxu1 %v3731_v38  ;;  %v1339_v41 = vsel %vm1287_vm4, %v1334_v35, %v1338_v18  ;;  %v3705_v46 = vld [vmem:[%s4948_s5 + $0xd0] sm:$0xff] }
 0x22b   : > { %v2282_v3 = vrot.slane %v2280_v0, 3  ;;  %v2285_v5 = vrot.slane %v2283_v1, 4  ;;  %1695 = vmatpush.bf16.msrb.mxu2 %v3705_v46  ;;  %v899_v0 = vunpack.c.l.b16 %v834_v58  ;;  %v3997_v1 = vld [vmem:[#allocation2 + $0x34] sm:$0xff]   ;;  %v1342_v6 = vor.u32 %v1340_v63, %v1338_v18 }
 0x22c   : > { %v787_v53 = vpack.c.bf16 %v779_v49, %v779_v49  ;;  %v3713_v49 = vld [vmem:[%s4948_s5 + $0x110] sm:$0xff] }
 0x22d   : > { %v2286_v11 = vor.u32 %v2285_v5, %v2282_v3  ;;  %v4502_v15 = vld [vmem:[#allocation2 + $0x38] sm:$0xff]   ;;  %1841 = vmatpush.bf16.msrb.mxu3 %v3713_v49  ;;  %v3727_v5 = vld [vmem:[%s4948_s5 + $0x140] sm:$0xff]  ;;  %v1981_v49 = vshll.u32 %v3719_v45, 16 }
 0x22e   : > { %817 = vst [vmem:[#allocation2 + $0x44] sm:$0xf] %v787_v53  ;;  %v2289_v23 = vshrl.u32 %v4502_v15, 16  ;;  %v2292_v25 = vshll.u32 %v4502_v15, 16  ;;  %2106 = vmatpush.bf16.msra.mxu1 %v3730_v28  ;;  %v3694_v48 = vld [vmem:[#allocation2 + $0x3c] sm:$0xff]  ;;  %v3794_v26 = vunpack.c.h.b16 %v4502_v15 }
 0x22f   : > { %v4495_v24 = vsel %vm1024_vm5, %v2277_v21, %v2286_v11  ;;  %v1344_v44 = vshll.u32 %v3694_v48, 16  ;;  %1696 = vmatpush.bf16.msrb.mxu2 %v3704_v54 }
 0x230   : > { %v2291_v32 = vrot.slane %v2289_v23, 3  ;;  %v2294_v33 = vrot.slane %v2292_v25, 4  ;;  %v1477_v25 = vld [vmem:[#allocation2 + $0x8] sm:$0x8] }
 0x231   : > { %v1346_v62 = vrot.slane %v1344_v44, 1  ;;  %1842 = vmatpush.bf16.msrb.mxu3 %v3712_v56  ;;  %v1528_v34 = vunpack.c.l.b16 %v1477_v25  ;;  %v3797_v56 = vunpack.c.l.b16 %v4457_v8  ;;  %v3722_v25 = vld [vmem:[#allocation2 + $0x24] sm:$0xff] }
 0x232   : > { %987 = vmatmul.bf16.gmra.mxu2 %v3992_v57  ;;  %v4533_v37 = vor.u32 %v2294_v33, %v2291_v32  ;;  %2107 = vmatpush.bf16.msra.mxu1 %v3729_v47  ;;  %v1478_v32 = vld [vmem:[#allocation2 + $0xc] sm:$0xf]  ;;  %v1348_v33 = vshrl.u32 %v3694_v48, 16  ;;  %v3720_v48 = vld [vmem:[#allocation2 + $0x14] sm:$0xff] }
 0x233   : > { %v1529_v18 = vunpack.c.l.b16 %v1478_v32  ;;  %v1986_v54 = vshll.u32 %v3720_v48, 16 }
 0x234   : > { %1435 = vmatmul.bf16.gmra.mxu1 %v1323_v61  ;;  %v4547_v60 = vsel %vm1024_vm5, %v2286_v11, %v4533_v37  ;;  %v3703_v61 = vld [vmem:[%s4948_s5 + $0xc0] sm:$0xff]  ;;  %v1023_v11 = vpack.c.b16 %v899_v0, %v899_v0  ;;  %v1350_v39 = vor.u32 %v1348_v33, %v1346_v62 }
 0x235   : > { %1184 = vmatmul.bf16.gmra.mxu3 %v4479_v59  ;;  %2398 = vmatmul.bf16.gmra.mxu0 %v4486_v43  ;;  %v4554_v42 = vld [vmem:[#allocation2 + $0x40] sm:$0xff]   ;;  %v1772_v63 = vpack.c.b16 %v3797_v56, %v1529_v18 }
 0x236   : > { %v2298_v50 = vshrl.u32 %v4554_v42, 16  ;;  %v2301_v53 = vshll.u32 %v4554_v42, 16  ;;  %2108 = vmatpush.bf16.msra.mxu1 %v3728_v55  ;;  %v1226_v3 = vld [vmem:[#allocation2 + $0x44] sm:$0x1]  ;;  %1697 = vmatpush.bf16.msrb.mxu2 %v3703_v61  ;;  %v1097_v51 = vshrl.u32 %v1023_v11, 16  ;;  %v1100_v17 = vshll.u32 %v1023_v11, 16 }
 0x237   : > { %v1277_v12 = vunpack.c.l.b16 %v1226_v3  ;;  %1843 = vmatpush.bf16.msrb.mxu3 %v3711_v52  ;;  %v1983_v55 = vrot.slane %v1981_v49, 1  ;;  %v1990_v11 = vshrl.u32 %v3720_v48, 16 }
 0x238   : > { %v2300_v57 = vrot.slane %v2298_v50, 3  ;;  %v2303_v21 = vrot.slane %v2301_v53, 4  ;;  %v1099_v22 = vrot.slane %v1097_v51, 3  ;;  %v1102_v29 = vrot.slane %v1100_v17, 4 }
 0x239   : > { %v1286_v16 = vpack.c.b16 %v1277_v12, %v1277_v12 }
 0x23a   : > { %v4583_v2 = vor.u32 %v2303_v21, %v2300_v57  ;;  %2109 = vmatpush.bf16.msra.mxu1 %v3727_v5  ;;  %v1103_v38 = vor.u32 %v1102_v29, %v1099_v22  ;;  %v1988_v57 = vrot.slane %v1986_v54, 1 }
 0x23b   : > { %v1352_v23 = vshll.u32 %v1286_v16, 16 }
 0x23c   : > { %v4595_v13 = vsel %vm1024_vm5, %v4533_v37, %v4583_v2  ;;  %v1104_v15 = vsel %vm1024_vm5, %v4533_v37, %v1103_v38  ;;  %v1979_v37 = vshrl.u32 %v3719_v45, 16  ;;  %v1992_v17 = vor.u32 %v1990_v11, %v1988_v57 }
 0x23d   : > { %v1354_v7 = vrot.slane %v1352_v23, 1 }
 0x23e   : > { %v1984_v61 = vor.u32 %v1983_v55, %v1979_v37  ;;  %v3968_v37 = vld [vmem:[#allocation2 + $0x24] sm:$0xff]  }
 0x23f   : > { %v1355_v40 = vsel %vm1287_vm4, %v1350_v39, %v1354_v7  ;;  %v3966_v39 = vld [vmem:[#allocation2 + $0x1c] sm:$0xff]  }
 0x242   : > { %992 = vmatmul.bf16.gmra.mxu2 %v3994_v9  ;;  %v1347_v9 = vsel %vm1287_vm4, %v1342_v6, %v1346_v62  ;;  %v1989_v62 = vsel %vm1287_vm4, %v1984_v61, %v1988_v57  ;;  %v3724_v61 = vld [vmem:[#allocation2 + $0x34] sm:$0xff] }
 0x244   : > { %1440 = vmatmul.bf16.gmra.mxu1 %v1331_v14  ;;  %v4599_v14 = vld [vmem:[#allocation2 + $0x48] sm:$0xff]  }
 0x245   : > { %1189 = vmatmul.bf16.gmra.mxu3 %v4486_v43  ;;  %2403 = vmatmul.bf16.gmra.mxu0 %v4495_v24  ;;  %v2307_v19 = vshrl.u32 %v4599_v14, 16  ;;  %v2310_v20 = vshll.u32 %v4599_v14, 16 }
 0x247   : > { %v2309_v30 = vrot.slane %v2307_v19, 3  ;;  %v2312_v31 = vrot.slane %v2310_v20, 4  ;;  %v3964_v19 = vld [vmem:[#allocation2 + $0x14] sm:$0xff]  }
 0x249   : > { %v4604_v35 = vor.u32 %v2312_v31, %v2309_v30  ;;  %v2002_v31 = vshll.u32 %v3722_v25, 16 }
 0x24b   : > { %v2314_v28 = vsel %vm1024_vm5, %v4583_v2, %v4604_v35 }
 0x252   : > { %997 = vmatmul.bf16.gmra.mxu2 %v3996_v36  ;;  %v907_v36 = vpack.c.b16 %v899_v0, %v3794_v26 }
 0x254   : > { %1445 = vmatmul.bf16.gmra.mxu1 %v1339_v41  ;;  %v1545_v41 = vpack.c.b16 %v1529_v18, %v1528_v34  ;;  %v2004_v34 = vrot.slane %v2002_v31, 1  ;;  %v3748_v31 = vld [vmem:[%s4948_s5 + $0x1e8] sm:$0xff] }
 0x255   : > { %1194 = vmatmul.bf16.gmra.mxu3 %v4495_v24  ;;  %2408 = vmatmul.bf16.gmra.mxu0 %v4547_v60 }
 0x256   : > { %v1555_v46 = vshrl.u32 %v1545_v41, 16  ;;  %v1558_v47 = vshll.u32 %v1545_v41, 16 }
 0x258   : > { %v1557_v50 = vrot.slane %v1555_v46, 3  ;;  %v1560_v53 = vrot.slane %v1558_v47, 4 }
 0x25a   : > { %v1561_v44 = vor.u32 %v1560_v53, %v1557_v50  ;;  %v2006_v53 = vshrl.u32 %v3722_v25, 16 }
 0x25c   : > { %v1570_v58 = vsel %vm1024_vm5, %v1561_v44, %v4463_v10  ;;  %v2008_v56 = vor.u32 %v2006_v53, %v2004_v34  ;;  %v3726_v53 = vld [vmem:[#allocation2 + $0x44] sm:$0xff] }
 0x262   : > { %1002 = vmatmul.bf16.gmra.mxu2 %v3997_v1  ;;  %v3721_v1 = vld [vmem:[#allocation2 + $0x1c] sm:$0xff] }
 0x263   : > { %v1994_v52 = vshll.u32 %v3721_v1, 16  ;;  %v1998_v7 = vshrl.u32 %v3721_v1, 16  ;;  %v2018_v1 = vshll.u32 %v3724_v61, 16 }
 0x264   : > { %1450 = vmatmul.bf16.gmra.mxu1 %v1347_v9 }
 0x265   : > { %1199 = vmatmul.bf16.gmra.mxu3 %v4547_v60  ;;  %2413 = vmatmul.bf16.gmra.mxu0 %v4595_v13  ;;  %v1996_v12 = vrot.slane %v1994_v52, 1  ;;  %v2020_v52 = vrot.slane %v2018_v1, 1 }
 0x267   : > { %v1997_v20 = vsel %vm1287_vm4, %v1992_v17, %v1996_v12  ;;  %v2000_v38 = vor.u32 %v1998_v7, %v1996_v12 }
 0x272   : > { %1007 = vmatmul.bf16.gmra.mxu2 %v907_v36 }
 0x274   : > { %1455 = vmatmul.bf16.gmra.mxu1 %v1355_v40  ;;  %v2005_v40 = vsel %vm1287_vm4, %v2000_v38, %v2004_v34  ;;  %v3764_v34 = vld [vmem:[%s4948_s5 + $0x228] sm:$0xff] }
 0x275   : > { %1204 = vmatmul.bf16.gmra.mxu3 %v1104_v15  ;;  %2418 = vmatmul.bf16.gmra.mxu0 %v2314_v28  ;;  %v3723_v28 = vld [vmem:[#allocation2 + $0x2c] sm:$0xff] }
 0x276   : > { %v2010_v48 = vshll.u32 %v3723_v28, 16 }
 0x278   : > { %v2012_v54 = vrot.slane %v2010_v48, 1 }
 0x27a   : > { %v2013_v57 = vsel %vm1287_vm4, %v2008_v56, %v2012_v54 }
 0x281   : > { %v1421_v21 = vpop.f32.mrf.mxu1 }
 0x282   : > { %1698 = vmatmul.bf16.vlgmr.msrb.gmra.mxu2 %v1570_v58 }
 0x284   : > { %2110 = vmatmul.bf16.vlgmr.msra.gmra.mxu1 %v1989_v62 }
 0x285   : > { %v973_v0 = vpop.f32.mrf.mxu2  ;;  %1844 = vmatmul.bf16.vlgmr.msrb.gmra.mxu3 %v1772_v63 }
 0x288   : > { %v1170_v3 = vpop.f32.mrf.mxu3 }
 0x289   : > { %v1171_v5 = vadd.f32 %v1170_v3, %v973_v0  ;;  %v1423_v6 = vpop.f32.mrf.mxu1 }
 0x28b   : > { %v4616_v8 = vadd.f32 %v1421_v21, %v1171_v5 }
 0x28d   : > { %v975_v9 = vpop.f32.mrf.mxu2 }
 0x290   : > { %v1172_v51 = vpop.f32.mrf.mxu3 }
 0x291   : > { %v1173_v10 = vadd.f32 %v1172_v51, %v975_v9  ;;  %v1426_v16 = vpop.f32.mrf.mxu1  ;;  %v3750_v51 = vld [vmem:[%s4948_s5 + $0x1f8] sm:$0xff] }
 0x292   : > { %1703 = vmatmul.bf16.gmra.mxu2 %v4476_v27 }
 0x293   : > { %v4620_v22 = vadd.f32 %v1423_v6, %v1173_v10  ;;  %v2014_v6 = vshrl.u32 %v3723_v28, 16  ;;  %v3970_v10 = vld [vmem:[#allocation2 + $0x2c] sm:$0xff]   ;;  %2526 = vmatpush.bf16.msra.mxu2 %v3750_v51  ;;  %v3763_v28 = vld [vmem:[%s4948_s5 + $0x220] sm:$0xff] }
 0x294   : > { %2115 = vmatmul.bf16.gmra.mxu1 %v1997_v20  ;;  %v3766_v20 = vld [vmem:[%s4948_s5 + $0x238] sm:$0xff] }
 0x295   : > { %v978_v23 = vpop.f32.mrf.mxu2  ;;  %1849 = vmatmul.bf16.gmra.mxu3 %v3964_v19  ;;  %v2016_v12 = vor.u32 %v2014_v6, %v2012_v54  ;;  %v2183_v54 = vld [vmem:[#allocation2 + $0x50] sm:$0xf] }
 0x296   : > { %2792 = vmatpush.bf16.msra.mxu3 %v3766_v20 }
 0x298   : > { %v1175_v26 = vpop.f32.mrf.mxu3 }
 0x299   : > { %v1176_v29 = vadd.f32 %v1175_v26, %v978_v23  ;;  %v1428_v30 = vpop.f32.mrf.mxu1  ;;  %v4651_v23 = vld [vmem:[#allocation2 + $0x3c] sm:$0xff] }
 0x29a   : > { %v2030_v51 = vshrl.u32 %v4651_v23, 16 }
 0x29b   : > { %v4622_v32 = vadd.f32 %v1426_v16, %v1176_v29  ;;  %v2021_v16 = vsel %vm1287_vm4, %v2016_v12, %v2020_v52 }
 0x29d   : > { %v980_v33 = vpop.f32.mrf.mxu2 }
 0x2a0   : > { %v1177_v18 = vpop.f32.mrf.mxu3 }
 0x2a1   : > { %v1178_v27 = vadd.f32 %v1177_v18, %v980_v33  ;;  %v1431_v36 = vpop.f32.mrf.mxu1  ;;  %v2026_v33 = vshll.u32 %v4651_v23, 16  ;;  %v3747_v18 = vld [vmem:[%s4948_s5 + $0x1e0] sm:$0xff] }
 0x2a2   : > { %1708 = vmatmul.bf16.gmra.mxu2 %v4479_v59  ;;  %v3973_v23 = vld [vmem:[#allocation2 + $0x3c] sm:$0xff]  }
 0x2a3   : > { %v4626_v41 = vadd.f32 %v1428_v30, %v1178_v27  ;;  %v3765_v30 = vld [vmem:[%s4948_s5 + $0x230] sm:$0xff]  ;;  %v2022_v27 = vshrl.u32 %v3724_v61, 16 }
 0x2a4   : > { %2120 = vmatmul.bf16.gmra.mxu1 %v2005_v40  ;;  %2793 = vmatpush.bf16.msra.mxu3 %v3765_v30 }
 0x2a5   : > { %v983_v15 = vpop.f32.mrf.mxu2  ;;  %1854 = vmatmul.bf16.gmra.mxu3 %v3966_v39 }
 0x2a8   : > { %v1180_v45 = vpop.f32.mrf.mxu3  ;;  %2794 = vmatpush.bf16.msra.mxu3 %v3764_v34 }
 0x2a9   : > { %v1181_v46 = vadd.f32 %v1180_v45, %v983_v15  ;;  %v1433_v47 = vpop.f32.mrf.mxu1  ;;  %v2024_v15 = vor.u32 %v2022_v27, %v2020_v52  ;;  %v3746_v45 = vld [vmem:[%s4948_s5 + $0x1d8] sm:$0xff]  ;;  %v3760_v52 = vld [vmem:[%s4948_s5 + $0x208] sm:$0xff] }
 0x2ab   : > { %v4628_v49 = vadd.f32 %v1431_v36, %v1181_v46  ;;  %v2028_v36 = vrot.slane %v2026_v33, 1  ;;  %v3972_v46 = vld [vmem:[#allocation2 + $0x34] sm:$0xff]  }
 0x2ac   : > { %2795 = vmatpush.bf16.msra.mxu3 %v3763_v28 }
 0x2ad   : > { %v985_v50 = vpop.f32.mrf.mxu2  ;;  %v2032_v30 = vor.u32 %v2030_v51, %v2028_v36 }
 0x2b0   : > { %v1182_v55 = vpop.f32.mrf.mxu3 }
 0x2b1   : > { %v1183_v59 = vadd.f32 %v1182_v55, %v985_v50  ;;  %v1436_v44 = vpop.f32.mrf.mxu1  ;;  %v3745_v50 = vld [vmem:[%s4948_s5 + $0x1d0] sm:$0xff] }
 0x2b2   : > { %1713 = vmatmul.bf16.gmra.mxu2 %v4486_v43 }
 0x2b3   : > { %v4632_v21 = vadd.f32 %v1433_v47, %v1183_v59  ;;  %v2029_v47 = vsel %vm1287_vm4, %v2024_v15, %v2028_v36  ;;  %v4686_v59 = vunpack.c.l.b16 %v2183_v54  ;;  %v2038_v54 = vshrl.u32 %v3726_v53, 16 }
 0x2b4   : > { %2125 = vmatmul.bf16.gmra.mxu1 %v2013_v57  ;;  %v3761_v57 = vld [vmem:[%s4948_s5 + $0x210] sm:$0xff] }
 0x2b5   : > { %v988_v58 = vpop.f32.mrf.mxu2  ;;  %1859 = vmatmul.bf16.gmra.mxu3 %v3968_v37  ;;  %v1493_v37 = vld [vmem:[#allocation2 + $0x48] sm:$0xf]  ;;  %v2243_v61 = vpack.c.b16 %v4686_v59, %v4686_v59 }
 0x2b6   : > { %v1544_v6 = vunpack.c.l.b16 %v1493_v37 }
 0x2b7   : > { %v2319_v1 = vshll.u32 %v2243_v61, 16 }
 0x2b8   : > { %v1185_v63 = vpop.f32.mrf.mxu3 }
 0x2b9   : > { %v1186_v62 = vadd.f32 %v1185_v63, %v988_v58  ;;  %v1438_v0 = vpop.f32.mrf.mxu1  ;;  %v3744_v58 = vld [vmem:[%s4948_s5 + $0x1c8] sm:$0xff]  ;;  %v2034_v63 = vshll.u32 %v3726_v53, 16  ;;  %v2321_v12 = vrot.slane %v2319_v1, 4  ;;  %v3751_v53 = vld [vmem:[#allocation2 + $0x14] sm:$0xff] }
 0x2bb   : > { %v4634_v3 = vadd.f32 %v1436_v44, %v1186_v62 }
 0x2bd   : > { %v990_v5 = vpop.f32.mrf.mxu2 }
 0x2c0   : > { %v1187_v9 = vpop.f32.mrf.mxu3 }
 0x2c1   : > { %v1188_v43 = vadd.f32 %v1187_v9, %v990_v5  ;;  %v4636_v11 = vpop.f32.mrf.mxu1  ;;  %v3743_v9 = vld [vmem:[%s4948_s5 + $0x1c0] sm:$0xff] }
 0x2c2   : > { %1718 = vmatmul.bf16.gmra.mxu2 %v4495_v24  ;;  %v3749_v24 = vld [vmem:[%s4948_s5 + $0x1f0] sm:$0xff] }
 0x2c3   : > { %v4643_v17 = vadd.f32 %v1438_v0, %v1188_v43  ;;  %2527 = vmatpush.bf16.msra.mxu2 %v3749_v24  ;;  %v2316_v0 = vshrl.u32 %v2243_v61, 16 }
 0x2c4   : > { %2130 = vmatmul.bf16.gmra.mxu1 %v2021_v16 }
 0x2c5   : > { %v993_v19 = vpop.f32.mrf.mxu2  ;;  %1864 = vmatmul.bf16.gmra.mxu3 %v3970_v10  ;;  %v2318_v43 = vrot.slane %v2316_v0, 3  ;;  %v2036_v10 = vrot.slane %v2034_v63, 1 }
 0x2c7   : > { %2528 = vmatpush.bf16.msra.mxu2 %v3748_v31  ;;  %v2322_v20 = vor.u32 %v2321_v12, %v2318_v43  ;;  %v1553_v31 = vpack.c.b16 %v1544_v6, %v1544_v6  ;;  %v2037_v34 = vsel %vm1287_vm4, %v2032_v30, %v2036_v10  ;;  %v2671_v12 = vshll.u32 %v3751_v53, 16 }
 0x2c8   : > { %v1190_v25 = vpop.f32.mrf.mxu3 }
 0x2c9   : > { %v4653_v26 = vadd.f32 %v1190_v25, %v993_v19  ;;  %v4655_v29 = vpop.f32.mrf.mxu1  ;;  %v1917_v19 = vld [vmem:[#allocation2 + $0x4c] sm:$0x1]  ;;  %v2323_v33 = vsel %vm1024_vm5, %v4604_v35, %v2322_v20  ;;  %v2669_v20 = vshrl.u32 %v3751_v53, 16 }
 0x2ca   : > { %2423 = vmatmul.bf16.gmra.mxu0 %v2323_v33 }
 0x2cb   : > { %2529 = vmatpush.bf16.msra.mxu2 %v3747_v18  ;;  %v1968_v18 = vunpack.c.l.b16 %v1917_v19 }
 0x2cd   : > { %v995_v7 = vpop.f32.mrf.mxu2 }
 0x2cf   : > { %2530 = vmatpush.bf16.msra.mxu2 %v3746_v45 }
 0x2d0   : > { %v1192_v38 = vpop.f32.mrf.mxu3 }
 0x2d1   : > { %v4670_v39 = vadd.f32 %v1192_v38, %v995_v7  ;;  %v1446_v40 = vpop.f32.mrf.mxu1  ;;  %v3759_v7 = vld [vmem:[%s4948_s5 + $0x200] sm:$0xff]  ;;  %v1626_v38 = vshrl.u32 %v1553_v31, 16 }
 0x2d2   : > { %1723 = vmatmul.bf16.gmra.mxu2 %v4547_v60  ;;  %v3762_v60 = vld [vmem:[%s4948_s5 + $0x218] sm:$0xff] }
 0x2d3   : > { %2796 = vmatpush.bf16.msra.mxu3 %v3762_v60  ;;  %2531 = vmatpush.bf16.msra.mxu2 %v3745_v50  ;;  %v1628_v45 = vrot.slane %v1626_v38, 3  ;;  %v3753_v38 = vld [vmem:[#allocation2 + $0x24] sm:$0xff] }
 0x2d4   : > { %2135 = vmatmul.bf16.gmra.mxu1 %v2029_v47 }
 0x2d5   : > { %v998_v48 = vpop.f32.mrf.mxu2  ;;  %1869 = vmatmul.bf16.gmra.mxu3 %v3972_v46 }
 0x2d7   : > { %2797 = vmatpush.bf16.msra.mxu3 %v3761_v57  ;;  %2532 = vmatpush.bf16.msra.mxu2 %v3744_v58 }
 0x2d8   : > { %v1195_v55 = vpop.f32.mrf.mxu3 }
 0x2d9   : > { %v1196_v44 = vadd.f32 %v1195_v55, %v998_v48  ;;  %v1448_v56 = vpop.f32.mrf.mxu1  ;;  %v3822_v55 = vunpack.c.h.b16 %v4554_v42  ;;  %v3752_v42 = vld [vmem:[#allocation2 + $0x1c] sm:$0xff] }
 0x2db   : > { %v4696_v62 = vadd.f32 %v1446_v40, %v1196_v44  ;;  %2798 = vmatpush.bf16.msra.mxu3 %v3760_v52  ;;  %2533 = vmatpush.bf16.msra.mxu2 %v3743_v9  ;;  %v1977_v40 = vpack.c.b16 %v1968_v18, %v1968_v18  ;;  %v2040_v44 = vor.u32 %v2038_v54, %v2036_v10  ;;  %v4724_v10 = vpop.f32.mrf.mxu0 }
 0x2dc   : > { %v1779_v63 = vpack.c.b16 %v1544_v6, %v3822_v55  ;;  %v2673_v6 = vrot.slane %v2671_v12, 1  ;;  %v2688_v12 = vshrl.u32 %v3753_v38, 16 }
 0x2dd   : > { %v1000_v5 = vpop.f32.mrf.mxu2  ;;  %v2042_v47 = vshll.u32 %v1977_v40, 16 }
 0x2df   : > { %2799 = vmatpush.bf16.msra.mxu3 %v3759_v7 }
 0x2e0   : > { %v1197_v16 = vpop.f32.mrf.mxu3 }
 0x2e1   : > { %v1198_v24 = vadd.f32 %v1197_v16, %v1000_v5  ;;  %v1451_v25 = vpop.f32.mrf.mxu1 }
 0x2e2   : > { %1728 = vmatmul.bf16.gmra.mxu2 %v4595_v13  ;;  %v1629_v13 = vshll.u32 %v1553_v31, 16  ;;  %v2674_v31 = vor.u32 %v2673_v6, %v2669_v20 }
 0x2e3   : > { %v4712_v27 = vadd.f32 %v1448_v56, %v1198_v24  ;;  %v2044_v56 = vrot.slane %v2042_v47, 1  ;;  %v3976_v47 = vld [vmem:[#allocation2 + $0x1c] sm:$0xff]  }
 0x2e4   : > { %2140 = vmatmul.bf16.gmra.mxu1 %v2037_v34  ;;  %v1631_v46 = vrot.slane %v1629_v13, 4  ;;  %v4730_v34 = vpop.f32.mrf.mxu0 }
 0x2e5   : > { %v1003_v36 = vpop.f32.mrf.mxu2  ;;  %1874 = vmatmul.bf16.gmra.mxu3 %v3973_v23  ;;  %v2045_v0 = vsel %vm1287_vm4, %v2040_v44, %v2044_v56 }
 0x2e6   : > { %v1632_v50 = vor.u32 %v1631_v46, %v1628_v45 }
 0x2e8   : > { %v1200_v15 = vpop.f32.mrf.mxu3  ;;  %v1633_v61 = vsel %vm1024_vm5, %v4583_v2, %v1632_v50  ;;  %v2676_v2 = vshll.u32 %v3752_v42, 16 }
 0x2e9   : > { %v1201_v35 = vadd.f32 %v1200_v15, %v1003_v36  ;;  %v1453_v28 = vpop.f32.mrf.mxu1 }
 0x2ea   : > { %v2678_v24 = vrot.slane %v2676_v2, 1 }
 0x2eb   : > { %v4714_v48 = vadd.f32 %v1451_v25, %v1201_v35  ;;  %v2684_v35 = vshll.u32 %v3753_v38, 16 }
 0x2ec   : > { %v2679_v7 = vsel %vm1287_vm4, %v2674_v31, %v2678_v24  ;;  %v4736_v45 = vpop.f32.mrf.mxu0 }
 0x2ed   : > { %v1005_v60 = vpop.f32.mrf.mxu2  ;;  %v2686_v50 = vrot.slane %v2684_v35, 1 }
 0x2f0   : > { %v1202_v37 = vpop.f32.mrf.mxu3 }
 0x2f1   : > { %v1203_v57 = vadd.f32 %v1202_v37, %v1005_v60  ;;  %v1456_v58 = vpop.f32.mrf.mxu1  ;;  %v2680_v60 = vshrl.u32 %v3752_v42, 16 }
 0x2f2   : > { %1733 = vmatmul.bf16.gmra.mxu2 %v1633_v61 }
 0x2f3   : > { %v4720_v1 = vadd.f32 %v1453_v28, %v1203_v57 }
 0x2f4   : > { %2145 = vmatmul.bf16.gmra.mxu1 %v2045_v0  ;;  %v4742_v0 = vpop.f32.mrf.mxu0 }
 0x2f5   : > { %v1008_v5 = vpop.f32.mrf.mxu2  ;;  %1879 = vmatmul.bf16.gmra.mxu3 %v1779_v63 }
 0x2f8   : > { %v1205_v52 = vpop.f32.mrf.mxu3 }
 0x2f9   : > { %v1206_v9 = vadd.f32 %v1205_v52, %v1008_v5  ;;  %v1458_v43 = vpop.f32.mrf.mxu1 }
 0x2fb   : > { %v4722_v51 = vadd.f32 %v1456_v58, %v1206_v9 }
 0x2fc   : > { %v4749_v20 = vpop.f32.mrf.mxu0 }
 0x2fd   : > { %v1010_v16 = vpop.f32.mrf.mxu2 }
 0x300   : > { %v1207_v19 = vpop.f32.mrf.mxu3 }
 0x301   : > { %v1208_v25 = vadd.f32 %v1207_v19, %v1010_v16  ;;  %v2111_v30 = vpop.f32.mrf.mxu1 }
 0x302   : > { %2534 = vmatmul.bf16.vlgmr.msra.gmra.mxu2 %v4465_v4 }
 0x303   : > { %v4727_v33 = vadd.f32 %v1458_v43, %v1208_v25  ;;  %v3978_v43 = vld [vmem:[#allocation2 + $0x24] sm:$0xff]  }
 0x305   : > { %v1699_v23 = vpop.f32.mrf.mxu2  ;;  %2800 = vmatmul.bf16.vlgmr.msra.gmra.mxu3 %v2679_v7 }
 0x306   : > { %v1739_v18 = vadd.f32 %v1699_v23, %v4616_v8  ;;  %v2682_v8 = vor.u32 %v2680_v60, %v2678_v24 }
 0x308   : > { %v1845_v36 = vpop.f32.mrf.mxu3  ;;  %v2687_v56 = vsel %vm1287_vm4, %v2682_v8, %v2686_v50 }
 0x309   : > { %v1885_v13 = vadd.f32 %v1845_v36, %v1739_v18  ;;  %v2113_v40 = vpop.f32.mrf.mxu1 }
 0x30b   : > { %v4733_v15 = vadd.f32 %v2111_v30, %v1885_v13  ;;  %v4755_v13 = vpop.f32.mrf.mxu0 }
 0x30d   : > { %v1701_v28 = vpop.f32.mrf.mxu2 }
 0x30e   : > { %v1740_v4 = vadd.f32 %v1701_v28, %v4620_v22  ;;  %v3754_v22 = vld [vmem:[#allocation2 + $0x2c] sm:$0xff] }
 0x30f   : > { %v2692_v53 = vshll.u32 %v3754_v22, 16  ;;  %v3980_v28 = vld [vmem:[#allocation2 + $0x2c] sm:$0xff]  }
 0x310   : > { %v1847_v46 = vpop.f32.mrf.mxu3 }
 0x311   : > { %v1886_v54 = vadd.f32 %v1847_v46, %v1740_v4  ;;  %v2116_v55 = vpop.f32.mrf.mxu1  ;;  %v2694_v2 = vrot.slane %v2692_v53, 1  ;;  %v2696_v4 = vshrl.u32 %v3754_v22, 16 }
 0x312   : > { %2539 = vmatmul.bf16.gmra.mxu2 %v3976_v47 }
 0x313   : > { %v4738_v44 = vadd.f32 %v2113_v40, %v1886_v54  ;;  %v2698_v60 = vor.u32 %v2696_v4, %v2694_v2 }
 0x315   : > { %v1704_v37 = vpop.f32.mrf.mxu2  ;;  %2805 = vmatmul.bf16.gmra.mxu3 %v2687_v56  ;;  %v4762_v56 = vpop.f32.mrf.mxu0 }
 0x316   : > { %v1741_v57 = vadd.f32 %v1704_v37, %v4622_v32  ;;  %v2690_v32 = vor.u32 %v2688_v12, %v2686_v50 }
 0x318   : > { %v1850_v58 = vpop.f32.mrf.mxu3  ;;  %v2695_v24 = vsel %vm1287_vm4, %v2690_v32, %v2694_v2 }
 0x319   : > { %v1887_v61 = vadd.f32 %v1850_v58, %v1741_v57  ;;  %v2118_v63 = vpop.f32.mrf.mxu1 }
 0x31b   : > { %v4744_v5 = vadd.f32 %v2116_v55, %v1887_v61 }
 0x31d   : > { %v1706_v52 = vpop.f32.mrf.mxu2  ;;  %v4767_v2 = vpop.f32.mrf.mxu0 }
 0x31e   : > { %v1742_v42 = vadd.f32 %v1706_v52, %v4626_v41  ;;  %v3755_v41 = vld [vmem:[#allocation2 + $0x34] sm:$0xff] }
 0x31f   : > { %v2700_v36 = vshll.u32 %v3755_v41, 16 }
 0x320   : > { %v1852_v9 = vpop.f32.mrf.mxu3 }
 0x321   : > { %v1888_v16 = vadd.f32 %v1852_v9, %v1742_v42  ;;  %v2121_v6 = vpop.f32.mrf.mxu1  ;;  %v2702_v46 = vrot.slane %v2700_v36, 1  ;;  %v3982_v42 = vld [vmem:[#allocation2 + $0x34] sm:$0xff]   ;;  %v2704_v9 = vshrl.u32 %v3755_v41, 16  ;;  %v1470_v36 = vadd.f32 %v4655_v29, %v4670_v39  ;;  %v3758_v39 = vld [vmem:[#allocation2 + $0x4c] sm:$0xff] }
 0x322   : > { %2544 = vmatmul.bf16.gmra.mxu2 %v3978_v43 }
 0x323   : > { %v4747_v19 = vadd.f32 %v2118_v63, %v1888_v16  ;;  %v2703_v50 = vsel %vm1287_vm4, %v2698_v60, %v2702_v46 }
 0x325   : > { %v1709_v25 = vpop.f32.mrf.mxu2  ;;  %2810 = vmatmul.bf16.gmra.mxu3 %v2695_v24 }
 0x326   : > { %v1743_v30 = vadd.f32 %v1709_v25, %v4628_v49 }
 0x328   : > { %v1855_v31 = vpop.f32.mrf.mxu3 }
 0x329   : > { %v1889_v7 = vadd.f32 %v1855_v31, %v1743_v30  ;;  %v2123_v18 = vpop.f32.mrf.mxu1  ;;  %v3757_v30 = vld [vmem:[#allocation2 + $0x44] sm:$0xff] }
 0x32b   : > { %v4753_v23 = vadd.f32 %v2121_v6, %v1889_v7  ;;  %v1469_v6 = vadd.f32 %v4636_v11, %v4653_v26  ;;  %v3984_v26 = vld [vmem:[#allocation2 + $0x3c] sm:$0xff]  }
 0x32d   : > { %v1711_v38 = vpop.f32.mrf.mxu2 }
 0x32e   : > { %v1744_v40 = vadd.f32 %v1711_v38, %v4632_v21  ;;  %v3756_v21 = vld [vmem:[#allocation2 + $0x3c] sm:$0xff]  ;;  %v2716_v38 = vshll.u32 %v3757_v30, 16 }
 0x32f   : > { %v2708_v22 = vshll.u32 %v3756_v21, 16  ;;  %v2712_v4 = vshrl.u32 %v3756_v21, 16  ;;  %v2720_v21 = vshrl.u32 %v3757_v30, 16 }
 0x330   : > { %v1857_v35 = vpop.f32.mrf.mxu3 }
 0x331   : > { %v1890_v47 = vadd.f32 %v1857_v35, %v1744_v40  ;;  %v2126_v55 = vpop.f32.mrf.mxu1  ;;  %v2710_v43 = vrot.slane %v2708_v22, 1 }
 0x332   : > { %2549 = vmatmul.bf16.gmra.mxu2 %v3980_v28 }
 0x333   : > { %v4758_v49 = vadd.f32 %v2123_v18, %v1890_v47  ;;  %v2409_v18 = vpop.f32.mrf.mxu0  ;;  %v2714_v60 = vor.u32 %v2712_v4, %v2710_v43 }
 0x335   : > { %v1714_v54 = vpop.f32.mrf.mxu2  ;;  %2815 = vmatmul.bf16.gmra.mxu3 %v2703_v50 }
 0x336   : > { %v1745_v8 = vadd.f32 %v1714_v54, %v4634_v3  ;;  %v2706_v3 = vor.u32 %v2704_v9, %v2702_v46  ;;  %v2718_v46 = vrot.slane %v2716_v38, 1 }
 0x338   : > { %v1860_v37 = vpop.f32.mrf.mxu3  ;;  %v2711_v32 = vsel %vm1287_vm4, %v2706_v3, %v2710_v43  ;;  %v2719_v50 = vsel %vm1287_vm4, %v2714_v60, %v2718_v46 }
 0x339   : > { %v1891_v57 = vadd.f32 %v1860_v37, %v1745_v8  ;;  %v2128_v53 = vpop.f32.mrf.mxu1  ;;  %v2724_v37 = vshll.u32 %v3758_v39, 16 }
 0x33b   : > { %v4764_v58 = vadd.f32 %v2126_v55, %v1891_v57 }
 0x33d   : > { %v1716_v61 = vpop.f32.mrf.mxu2 }
 0x33e   : > { %v1746_v63 = vadd.f32 %v1716_v61, %v4643_v17  ;;  %v2607_v61 = vld [vmem:[#allocation2 + $0x54] sm:$0x1] }
 0x33f   : > { %v2658_v43 = vunpack.c.l.b16 %v2607_v61 }
 0x340   : > { %v1862_v52 = vpop.f32.mrf.mxu3 }
 0x341   : > { %v1892_v12 = vadd.f32 %v1862_v52, %v1746_v63  ;;  %v2131_v41 = vpop.f32.mrf.mxu1  ;;  %v2722_v52 = vor.u32 %v2720_v21, %v2718_v46  ;;  %v2429_v46 = vadd.f32 %v4724_v10, %v4733_v15  ;;  %v2432_v15 = vadd.f32 %v4742_v0, %v4747_v19 }
 0x342   : > { %2554 = vmatmul.bf16.gmra.mxu2 %v3982_v42  ;;  %v2726_v42 = vrot.slane %v2724_v37, 1  ;;  %v2435_v19 = vadd.f32 %v4762_v56, %v4764_v58 }
 0x343   : > { %v4769_v16 = vadd.f32 %v2128_v53, %v1892_v12  ;;  %v3985_v53 = vld [vmem:[#allocation2 + $0x44] sm:$0xff]  }
 0x345   : > { %v1719_v24 = vpop.f32.mrf.mxu2  ;;  %2820 = vmatmul.bf16.gmra.mxu3 %v2711_v32 }
 0x346   : > { %v1747_v17 = vadd.f32 %v1719_v24, %v1469_v6  ;;  %v2667_v6 = vpack.c.b16 %v2658_v43, %v2658_v43 }
 0x348   : > { %v1865_v25 = vpop.f32.mrf.mxu3 }
 0x349   : > { %v1893_v31 = vadd.f32 %v1865_v25, %v1747_v17  ;;  %v2728_v17 = vshrl.u32 %v3758_v39, 16  ;;  %v2732_v25 = vshll.u32 %v2667_v6, 16 }
 0x34b   : > { %v2159_v7 = vadd.f32 %v2131_v41, %v1893_v31 }
 0x34d   : > { %v1721_v40 = vpop.f32.mrf.mxu2  ;;  %v4776_v35 = vadd.f32 %v2409_v18, %v2159_v7  ;;  %v2730_v7 = vor.u32 %v2728_v17, %v2726_v42  ;;  %v2734_v18 = vrot.slane %v2732_v25, 1  ;;  %v2436_v25 = vadd.f32 %v4767_v2, %v4769_v16 }
 0x34e   : > { %v1748_v28 = vadd.f32 %v1721_v40, %v1470_v36 }
 0x350   : > { %v1867_v11 = vpop.f32.mrf.mxu3 }
 0x351   : > { %v4778_v47 = vadd.f32 %v1867_v11, %v1748_v28 }
 0x352   : > { %2559 = vmatmul.bf16.gmra.mxu2 %v3984_v26 }
 0x355   : > { %v1724_v54 = vpop.f32.mrf.mxu2  ;;  %2825 = vmatmul.bf16.gmra.mxu3 %v2719_v50 }
 0x356   : > { %v1749_v55 = vadd.f32 %v1724_v54, %v4696_v62  ;;  %v2727_v62 = vsel %vm1287_vm4, %v2722_v52, %v2726_v42 }
 0x358   : > { %v1870_v29 = vpop.f32.mrf.mxu3 }
 0x359   : > { %v4782_v8 = vadd.f32 %v1870_v29, %v1749_v55 }
 0x35d   : > { %v1726_v57 = vpop.f32.mrf.mxu2 }
 0x35e   : > { %v1750_v22 = vadd.f32 %v1726_v57, %v4712_v27  ;;  %v3850_v27 = vunpack.c.h.b16 %v4599_v14 }
 0x360   : > { %v1872_v63 = vpop.f32.mrf.mxu3  ;;  %v2469_v41 = vpack.c.b16 %v4686_v59, %v3850_v27 }
 0x361   : > { %v4785_v9 = vadd.f32 %v1872_v63, %v1750_v22 }
 0x362   : > { %2564 = vmatmul.bf16.gmra.mxu2 %v3985_v53 }
 0x365   : > { %v1729_v12 = vpop.f32.mrf.mxu2  ;;  %2830 = vmatmul.bf16.gmra.mxu3 %v2727_v62 }
 0x366   : > { %v1751_v3 = vadd.f32 %v1729_v12, %v4714_v48  ;;  %v2735_v48 = vsel %vm1287_vm4, %v2730_v7, %v2734_v18 }
 0x368   : > { %v1875_v32 = vpop.f32.mrf.mxu3 }
 0x369   : > { %v4789_v24 = vadd.f32 %v1875_v32, %v1751_v3 }
 0x36d   : > { %v1731_v30 = vpop.f32.mrf.mxu2 }
 0x36e   : > { %v1752_v31 = vadd.f32 %v1731_v30, %v4720_v1 }
 0x370   : > { %v1877_v36 = vpop.f32.mrf.mxu3 }
 0x371   : > { %v4794_v38 = vadd.f32 %v1877_v36, %v1752_v31 }
 0x372   : > { %2569 = vmatmul.bf16.gmra.mxu2 %v2469_v41 }
 0x375   : > { %v1734_v40 = vpop.f32.mrf.mxu2  ;;  %2835 = vmatmul.bf16.gmra.mxu3 %v2735_v48 }
 0x376   : > { %v1753_v28 = vadd.f32 %v1734_v40, %v4722_v51  ;;  %v2430_v51 = vadd.f32 %v4730_v34, %v4738_v44  ;;  %v2433_v44 = vadd.f32 %v4749_v20, %v4753_v23  ;;  %v2133_v23 = vpop.f32.mrf.mxu1 }
 0x378   : > { %v1880_v14 = vpop.f32.mrf.mxu3 }
 0x379   : > { %v4798_v11 = vadd.f32 %v1880_v14, %v1753_v28 }
 0x37d   : > { %v1736_v26 = vpop.f32.mrf.mxu2 }
 0x37e   : > { %v1754_v1 = vadd.f32 %v1736_v26, %v4727_v33  ;;  %v2431_v33 = vadd.f32 %v4736_v45, %v4744_v5  ;;  %v2434_v5 = vadd.f32 %v4755_v13, %v4758_v49  ;;  %v2411_v13 = vpop.f32.mrf.mxu0  ;;  %v2136_v7 = vpop.f32.mrf.mxu1 }
 0x380   : > { %v1882_v4 = vpop.f32.mrf.mxu3 }
 0x381   : > { %v4801_v59 = vadd.f32 %v1882_v4, %v1754_v1 }
 0x385   : > { %v2535_v60 = vpop.f32.mrf.mxu2 }
 0x386   : > { %v2575_v50 = vadd.f32 %v2535_v60, %v2429_v46  ;;  %v2414_v58 = vpop.f32.mrf.mxu0  ;;  %v2138_v28 = vpop.f32.mrf.mxu1 }
 0x388   : > { %v2801_v54 = vpop.f32.mrf.mxu3 }
 0x389   : > { %v4805_v55 = vadd.f32 %v2801_v54, %v2575_v50 }
 0x38d   : > { %v2537_v29 = vpop.f32.mrf.mxu2 }
 0x38e   : > { %v2576_v39 = vadd.f32 %v2537_v29, %v2430_v51  ;;  %v2416_v26 = vpop.f32.mrf.mxu0  ;;  %v2141_v16 = vpop.f32.mrf.mxu1 }
 0x390   : > { %v2803_v37 = vpop.f32.mrf.mxu3 }
 0x391   : > { %v4809_v57 = vadd.f32 %v2803_v37, %v2576_v39 }
 0x395   : > { %v2540_v22 = vpop.f32.mrf.mxu2 }
 0x396   : > { %v2577_v21 = vadd.f32 %v2540_v22, %v2431_v33  ;;  %v2419_v4 = vpop.f32.mrf.mxu0  ;;  %v2143_v50 = vpop.f32.mrf.mxu1 }
 0x398   : > { %v2806_v61 = vpop.f32.mrf.mxu3 }
 0x399   : > { %v4813_v10 = vadd.f32 %v2806_v61, %v2577_v21  ;;  %v2164_v61 = vadd.f32 %v2143_v50, %v4794_v38  ;;  %v2160_v38 = vadd.f32 %v2133_v23, %v4778_v47 }
 0x39d   : > { %v2542_v63 = vpop.f32.mrf.mxu2 }
 0x39e   : > { %v2578_v53 = vadd.f32 %v2542_v63, %v2432_v15  ;;  %v2421_v51 = vpop.f32.mrf.mxu0  ;;  %v2146_v39 = vpop.f32.mrf.mxu1 }
 0x39f   : > { %v2165_v22 = vadd.f32 %v2146_v39, %v4798_v11 }
 0x3a0   : > { %v2808_v52 = vpop.f32.mrf.mxu3 }
 0x3a1   : > { %v4817_v34 = vadd.f32 %v2808_v52, %v2578_v53  ;;  %v2163_v52 = vadd.f32 %v2141_v16, %v4789_v24  ;;  %v4041_v24 = vld [vmem:[%s4949_s6] ss:$0 sm:$0xff] }
 0x3a5   : > { %v2545_v42 = vpop.f32.mrf.mxu2 }
 0x3a6   : > { %v2579_v43 = vadd.f32 %v2545_v42, %v2433_v44  ;;  %v2424_v37 = vpop.f32.mrf.mxu0  ;;  %v2148_v15 = vpop.f32.mrf.mxu1 }
 0x3a7   : > { %v2166_v63 = vadd.f32 %v2148_v15, %v4801_v59  ;;  %v2443_v44 = vadd.f32 %v2424_v37, %v2165_v22 }
 0x3a8   : > { %v2811_v62 = vpop.f32.mrf.mxu3 }
 0x3a9   : > { %v4821_v45 = vadd.f32 %v2811_v62, %v2579_v43  ;;  %v2162_v43 = vadd.f32 %v2138_v28, %v4785_v9  ;;  %v2442_v62 = vadd.f32 %v2421_v51, %v2164_v61 }
 0x3ab   : > { %v2865_v22 = vadd.f32 %v4041_v24, %v4821_v45 }
 0x3ad   : > { %v2547_v12 = vpop.f32.mrf.mxu2  ;;  %v2881_v15 = vmax.f32 %v2865_v22, 0.0 }
 0x3ae   : > { %v2580_v3 = vadd.f32 %v2547_v12, %v2434_v5  ;;  %v2426_v42 = vpop.f32.mrf.mxu0 }
 0x3af   : > { %v2444_v12 = vadd.f32 %v2426_v42, %v2166_v63  ;;  %v2925_v42 = vld [vmem:[%s4951_s8 + $0x58] sm:$0xff] }
 0x3b0   : > { %v2813_v6 = vpop.f32.mrf.mxu3 }
 0x3b1   : > { %v4825_v0 = vadd.f32 %v2813_v6, %v2580_v3  ;;  %v2161_v3 = vadd.f32 %v2136_v7, %v4782_v8  ;;  %v2441_v6 = vadd.f32 %v2419_v4, %v2163_v52 }
 0x3b3   : > { %v2439_v9 = vadd.f32 %v2414_v58, %v2161_v3  ;;  %v2866_v37 = vadd.f32 %v4041_v24, %v4825_v0  ;;  %v2861_v0 = vadd.f32 %v4041_v24, %v4805_v55  ;;  %v2928_v55 = vld [vmem:[%s4951_s8 + $0x70] sm:$0xff] }
 0x3b4   : > { %v2920_v3 = vld [vmem:[%s4951_s8 + $0x30] sm:$0xff] }
 0x3b5   : > { %v2550_v32 = vpop.f32.mrf.mxu2  ;;  %v2882_v61 = vmax.f32 %v2866_v37, 0.0  ;;  %v2877_v45 = vmax.f32 %v2861_v0, 0.0 }
 0x3b6   : > { %v2581_v27 = vadd.f32 %v2550_v32, %v2435_v19 }
 0x3b8   : > { %v2816_v17 = vpop.f32.mrf.mxu3 }
 0x3b9   : > { %v4829_v20 = vadd.f32 %v2816_v17, %v2581_v27  ;;  %v2440_v27 = vadd.f32 %v2416_v26, %v2162_v43  ;;  %v2924_v43 = vld [vmem:[%s4951_s8 + $0x50] sm:$0xff] }
 0x3bd   : > { %v2552_v30 = vpop.f32.mrf.mxu2 }
 0x3be   : > { %v2582_v31 = vadd.f32 %v2552_v30, %v2436_v25 }
 0x3c0   : > { %v2818_v49 = vpop.f32.mrf.mxu3 }
 0x3c1   : > { %v4833_v41 = vadd.f32 %v2818_v49, %v2582_v31 }
 0x3c5   : > { %v2555_v18 = vpop.f32.mrf.mxu2 }
 0x3c6   : > { %v2583_v36 = vadd.f32 %v2555_v18, %v4776_v35  ;;  %v2438_v18 = vadd.f32 %v2411_v13, %v2160_v38  ;;  %v2916_v38 = vld [vmem:[%s4951_s8 + $0x10] sm:$0xff] }
 0x3c8   : > { %v2821_v56 = vpop.f32.mrf.mxu3 }
 0x3c9   : > { %v4836_v48 = vadd.f32 %v2821_v56, %v2583_v36 }
 0x3cd   : > { %v2557_v40 = vpop.f32.mrf.mxu2 }
 0x3ce   : > { %v2584_v28 = vadd.f32 %v2557_v40, %v2438_v18 }
 0x3d0   : > { %v2823_v14 = vpop.f32.mrf.mxu3 }
 0x3d5   : > { %v2560_v1 = vpop.f32.mrf.mxu2 }
 0x3d6   : > { %v2585_v8 = vadd.f32 %v2560_v1, %v2439_v9 }
 0x3d8   : > { %v2826_v2 = vpop.f32.mrf.mxu3 }
 0x3d9   : > { %v2851_v16 = vadd.f32 %v2826_v2, %v2585_v8 }
 0x3db   : > { %v2871_v58 = vadd.f32 %v4041_v24, %v2851_v16 }
 0x3dd   : > { %v2562_v46 = vpop.f32.mrf.mxu2  ;;  %v2887_v40 = vmax.f32 %v2871_v58, 0.0 }
 0x3de   : > { %v2586_v30 = vadd.f32 %v2562_v46, %v2440_v27  ;;  %v2914_v27 = vld [vmem:[%s4951_s8] sm:$0xff] }
 0x3e0   : > { %v2828_v60 = vpop.f32.mrf.mxu3 }
 0x3e1   : > { %v2852_v47 = vadd.f32 %v2828_v60, %v2586_v30  ;;  %v2868_v60 = vadd.f32 %v4041_v24, %v4833_v41  ;;  %v2863_v41 = vadd.f32 %v4041_v24, %v4813_v10  ;;  %v2929_v10 = vld [vmem:[%s4951_s8 + $0x78] sm:$0xff] }
 0x3e3   : > { %v2872_v51 = vadd.f32 %v4041_v24, %v2852_v47 }
 0x3e5   : > { %v2565_v54 = vpop.f32.mrf.mxu2  ;;  %v2888_v1 = vmax.f32 %v2872_v51, 0.0 }
 0x3e6   : > { %v2587_v59 = vadd.f32 %v2565_v54, %v2441_v6  ;;  %v2850_v54 = vadd.f32 %v2823_v14, %v2584_v28  ;;  %v2919_v6 = vld [vmem:[%s4951_s8 + $0x28] sm:$0xff] }
 0x3e8   : > { %v2831_v29 = vpop.f32.mrf.mxu3  ;;  %v2870_v13 = vadd.f32 %v4041_v24, %v2850_v54 }
 0x3e9   : > { %v2853_v7 = vadd.f32 %v2831_v29, %v2587_v59  ;;  %v2869_v29 = vadd.f32 %v4041_v24, %v4836_v48  ;;  %v2864_v48 = vadd.f32 %v4041_v24, %v4817_v34  ;;  %v2893_v34 = vld [vmem:[%s4950_s7] sm:$0x1] }
 0x3ea   : > { %v2886_v2 = vmax.f32 %v2870_v13, 0.0 }
 0x3eb   : > { %v2873_v4 = vadd.f32 %v4041_v24, %v2853_v7  ;;  %v2885_v14 = vmax.f32 %v2869_v29, 0.0  ;;  %v2880_v63 = vmax.f32 %v2864_v48, 0.0 }
 0x3ed   : > { %v2567_v35 = vpop.f32.mrf.mxu2  ;;  %v2889_v46 = vmax.f32 %v2873_v4, 0.0 }
 0x3ee   : > { %v2588_v11 = vadd.f32 %v2567_v35, %v2442_v62  ;;  %v2867_v35 = vadd.f32 %v4041_v24, %v4829_v20  ;;  %v2862_v20 = vadd.f32 %v4041_v24, %v4809_v57  ;;  %v2927_v57 = vld [vmem:[%s4951_s8 + $0x68] sm:$0xff] }
 0x3ef   : > { %v2923_v62 = vld [vmem:[%s4951_s8 + $0x48] sm:$0xff] }
 0x3f0   : > { %v2833_v33 = vpop.f32.mrf.mxu3  ;;  %v2878_v52 = vmax.f32 %v2862_v20, 0.0 }
 0x3f1   : > { %v2854_v31 = vadd.f32 %v2833_v33, %v2588_v11  ;;  %v2884_v33 = vmax.f32 %v2868_v60, 0.0  ;;  %v2918_v11 = vld [vmem:[%s4951_s8 + $0x20] sm:$0xff] }
 0x3f3   : > { %v2874_v23 = vadd.f32 %v4041_v24, %v2854_v31 }
 0x3f5   : > { %v2570_v21 = vpop.f32.mrf.mxu2  ;;  %v2890_v39 = vmax.f32 %v2874_v23, 0.0 }
 0x3f6   : > { %v2589_v5 = vadd.f32 %v2570_v21, %v2443_v44  ;;  %v2883_v21 = vmax.f32 %v2867_v35, 0.0  ;;  %v2926_v44 = vld [vmem:[%s4951_s8 + $0x60] sm:$0xff] }
 0x3f8   : > { %v2836_v53 = vpop.f32.mrf.mxu3 }
 0x3f9   : > { %v2855_v17 = vadd.f32 %v2836_v53, %v2589_v5  ;;  %v2879_v53 = vmax.f32 %v2863_v41, 0.0  ;;  %v2922_v5 = vld [vmem:[%s4951_s8 + $0x40] sm:$0xff] }
 0x3fb   : > { %v2875_v36 = vadd.f32 %v4041_v24, %v2855_v17  ;;  %v2930_v17 = vld [vmem:[%s4952_s9] sm:$0x1] }
 0x3fd   : > { %v2572_v19 = vpop.f32.mrf.mxu2  ;;  %v2891_v50 = vmax.f32 %v2875_v36, 0.0 }
 0x3fe   : > { %v2590_v32 = vadd.f32 %v2572_v19, %v2444_v12  ;;  %v2921_v12 = vld [vmem:[%s4951_s8 + $0x38] sm:$0xff] }
 0x3ff   : > { %v2917_v19 = vld [vmem:[%s4951_s8 + $0x18] sm:$0xff] }
 0x400   : > { %v2838_v25 = vpop.f32.mrf.mxu3 }
 0x401   : > { %v2856_v49 = vadd.f32 %v2838_v25, %v2590_v32  ;;  %v2915_v32 = vld [vmem:[%s4951_s8 + $0x8] sm:$0xff] }
 0x403   : > { %v2876_v56 = vadd.f32 %v4041_v24, %v2856_v49 }
 0x405   : > { %v2892_v26 = vmax.f32 %v2876_v56, 0.0 }
 0x407   : > { %2894 = vmatpush.msrb.mxu1 %v2892_v26 }
 0x409   : > { %2895 = vmatpush.msrb.mxu1 %v2891_v50 }
 0x40b   : > { %2896 = vmatpush.msrb.mxu1 %v2890_v39 }
 0x40d   : > { %2897 = vmatpush.msrb.mxu1 %v2889_v46 }
 0x40f   : > { %2898 = vmatpush.msrb.mxu1 %v2888_v1 }
 0x411   : > { %2899 = vmatpush.msrb.mxu1 %v2887_v40 }
 0x413   : > { %2900 = vmatpush.msrb.mxu1 %v2886_v2 }
 0x415   : > { %2901 = vmatpush.msrb.mxu1 %v2885_v14 }
 0x417   : > { %2902 = vmatpush.msrb.mxu1 %v2884_v33 }
 0x419   : > { %2903 = vmatpush.msrb.mxu1 %v2883_v21 }
 0x41b   : > { %2904 = vmatpush.msrb.mxu1 %v2882_v61 }
 0x41d   : > { %2905 = vmatpush.msrb.mxu1 %v2881_v15 }
 0x41f   : > { %2906 = vmatpush.msrb.mxu1 %v2880_v63 }
 0x421   : > { %2907 = vmatpush.msrb.mxu1 %v2879_v53 }
 0x423   : > { %2908 = vmatpush.msrb.mxu1 %v2878_v52 }
 0x425   : > { %2909 = vmatpush.msrb.mxu1 %v2877_v45 }
 0x426   : > { %2910 = vmatmul.f32.vlgmr.msrb.gmra.mxu1 %v2893_v34 }
 0x427   : > { %2931 = vmatpush.msra.mxu1 %v2929_v10 }
 0x429   : > { %2932 = vmatpush.msra.mxu1 %v2928_v55 }
 0x42b   : > { %2933 = vmatpush.msra.mxu1 %v2927_v57 }
 0x42d   : > { %2934 = vmatpush.msra.mxu1 %v2926_v44 }
 0x42f   : > { %2935 = vmatpush.msra.mxu1 %v2925_v42 }
 0x431   : > { %2936 = vmatpush.msra.mxu1 %v2924_v43 }
 0x433   : > { %2937 = vmatpush.msra.mxu1 %v2923_v62 }
 0x435   : > { %2938 = vmatpush.msra.mxu1 %v2922_v5 }
 0x437   : > { %2939 = vmatpush.msra.mxu1 %v2921_v12 }
 0x439   : > { %2940 = vmatpush.msra.mxu1 %v2920_v3 }
 0x43b   : > { %2941 = vmatpush.msra.mxu1 %v2919_v6 }
 0x43d   : > { %2942 = vmatpush.msra.mxu1 %v2918_v11 }
 0x43f   : > { %2943 = vmatpush.msra.mxu1 %v2917_v19 }
 0x441   : > { %2944 = vmatpush.msra.mxu1 %v2916_v38 }
 0x443   : > { %2945 = vmatpush.msra.mxu1 %v2915_v32 }
 0x445   : > { %2946 = vmatpush.msra.mxu1 %v2914_v27 }
 0x4a3   : > { %v2911_v59 = vpop.f32.mrf.mxu1 }
 0x4a4   : > { %2947 = vmatmul.f32.vlgmr.msra.gmra.mxu1 %v2911_v59 }
 0x521   : > { %v2948_v25 = vpop.f32.mrf.mxu1 }
 0x522   : > { %v2949_v24 = vadd.f32 %v2948_v25, %v2930_v17 }
 0x524   : > { %2951 = vst [vmem:[%s351_s25] sm:$0x1] %v2949_v24 }
 0x525   : > { %4069 = shalt.err (!%p4066_p3)
}
 0x526   : > { %3998 = dma.vmem_to_hbm [thread:$0]  (%p4201_p5), %s2964_s26, 16, %s2966_s27, %s2953_s28  }
 0x527 PF: > { %p4004_p4 = scmp.ge.s32.totalorder %s4104_s16, 2  ;;  %s2977_s30 = sand.u32 1, %s4092_s13  }
 0x528   : > { %s2978_s18 = scalar_lea.sflag [#allocation4], %s2977_s30 }
 0x529   : > { %p4001_p7 = pnand %p4004_p4, %p4205_p6 }
 0x52b   : > { %p4002_p8 = pneg %p4001_p7 }
 0x52d   : > { %4087 = dma.done.wait (%p4002_p8), %s2978_s18, 16  }
 0x52e   : > { %4089 = vsyncadd (%p4002_p8), %s2978_s18, 4294967280  ;;  %p20_p9 = scmp.ge.s32.totalorder %s4188_s19, 4   ;;  %s4958_s13 = smov %s4096_s14 }
 0x52f   : > { %s4959_s14 = smov %s4100_s15  ;;  %s4960_s15 = smov %s4199_s22 }
 0x530   : > { %s4961_s16 = smov %s4188_s19  ;;  %22 = sbr.rel (!%p20_p9) target bundleno = 5 (0x5), region = 103 }
 0x535   :  { %2983 = vsyncpa [#allocation4], 1 }
 0x536   :  { %2985 = vsyncpa [#allocation4 + $0x1], 1 }

</bundles_post_ra>
